<compile_context>
chip_gen: v7x
topology: tpu7x:2x2x1
jax: 0.10.0
libtpu: 0.0.40
codegen_flags: <defaults>
</compile_context>

<pallas_src>
import functools

import numpy as np
import jax
import jax.numpy as jnp
from jax.experimental import pallas as pl
from jax.experimental.pallas import tpu as pltpu


# ----------------------------------------------------------------------------
# Deterministic filter init (mirrors BigVGAN kaiser_sinc_filter1d)
# ----------------------------------------------------------------------------
def kaiser_sinc_filter1d(cutoff, half_width, kernel_size):
    even = kernel_size % 2 == 0
    half_size = kernel_size // 2
    delta_f = 4.0 * half_width
    A = 2.285 * (half_size - 1) * np.pi * delta_f + 7.95
    if A > 50.0:
        beta = 0.1102 * (A - 8.7)
    elif A >= 21.0:
        beta = 0.5842 * (A - 21.0) ** 0.4 + 0.07886 * (A - 21.0)
    else:
        beta = 0.0
    window = np.kaiser(kernel_size, beta)
    if even:
        time = np.arange(-half_size, half_size) + 0.5
    else:
        time = np.arange(kernel_size) - half_size
    if cutoff == 0:
        filt = np.zeros_like(time)
    else:
        filt = 2.0 * cutoff * window * np.sinc(2.0 * cutoff * time)
        filt = filt / np.sum(filt)
    return filt.reshape(1, 1, kernel_size).astype(np.float32)


# ----------------------------------------------------------------------------
# Kernel constants (specialised to ratio=2, kernel_size=12)
# ----------------------------------------------------------------------------
_HALO = 8        # x-domain halo per side (the 12-tap up-conv needs >= 5)
_H2 = 4          # upsampled-phase halo per side (the 12-tap down-conv needs >= 3)
_HALO_BLK = 128  # lane-aligned width of the neighbour halo blocks


def _round_up(v, m):
    return ((v + m - 1) // m) * m


def _band_matrices(up_taps, dn_taps, tile_t, ratio_scale):
    """Banded matrices implementing the polyphase up/down convolutions.

    x_ext (C, W1) @ A_{even,odd} (W1, W2)  -> upsampled phases (C, W2)
    a_{even,odd} (C, W2) @ D_{even,odd} (W2, tile_t) -> downsampled output.
    The ratio scaling of UpSample1d is folded into A.
    """
    w1 = tile_t + 2 * _HALO
    w2 = tile_t + 2 * _H2
    j = np.arange(w2)
    t = np.arange(tile_t)
    off = _HALO - _H2

    a_even = jnp.zeros((w1, w2), jnp.float32)
    a_odd = jnp.zeros((w1, w2), jnp.float32)
    for p in range(6):
        # u_even[s] = r * sum_p wu[2p+1] * x[s + 2 - p]
        a_even = a_even.at[j + off + 2 - p, j].set(ratio_scale * up_taps[2 * p + 1])
        # u_odd[s]  = r * sum_p wu[2p]   * x[s + 3 - p]
        a_odd = a_odd.at[j + off + 3 - p, j].set(ratio_scale * up_taps[2 * p])

    d_even = jnp.zeros((w2, tile_t), jnp.float32)
    d_odd = jnp.zeros((w2, tile_t), jnp.float32)
    for d in range(-2, 4):      # y[t] += wd[2d+5] * a_even[t + d]
        d_even = d_even.at[t + d + _H2, t].set(dn_taps[2 * d + 5])
    for d in range(-3, 3):      # y[t] += wd[2d+6] * a_odd[t + d]
        d_odd = d_odd.at[t + d + _H2, t].set(dn_taps[2 * d + 6])
    return a_even, a_odd, d_even, d_odd


# ----------------------------------------------------------------------------
# Fused kernel: one (batch, time-tile) block per grid step.
# ----------------------------------------------------------------------------
def _activation1d_kernel(xc_ref, xl_ref, xr_ref, ae_ref, ao_ref, de_ref, do_ref,
                         alpha_ref, o_ref, *, t_valid):
    C = xc_ref.shape[1]
    tile_t = xc_ref.shape[2]
    w2 = ae_ref.shape[1]

    # Assemble the haloed input window (C, tile_t + 2*HALO).  Halo columns come
    # from the 128-wide neighbour blocks; boundary tiles read the zero guard
    # bands added by the wrapper (== the reference's zero padding of x).
    xl = xl_ref[0, :, _HALO_BLK - _HALO:]           # (C, HALO)
    xr = xr_ref[0, :, :_HALO]                       # (C, HALO)
    x_ext = jnp.concatenate([xl, xc_ref[0], xr], axis=-1)

    # UpSample1d (conv_transpose1d stride=2 + crop), polyphase, on the MXU.
    u_even = jnp.dot(x_ext, ae_ref[...], preferred_element_type=jnp.float32)
    u_odd = jnp.dot(x_ext, ao_ref[...], preferred_element_type=jnp.float32)

    # Snake activation (per-channel alpha); broadcasts hoisted once per block.
    alpha = alpha_ref[...]                          # (C, 1)
    alpha_b = jnp.broadcast_to(alpha, (C, w2))
    inv_b = jnp.broadcast_to(1.0 / (alpha + 1e-9), (C, w2))
    se = jnp.sin(alpha_b * u_even)
    so = jnp.sin(alpha_b * u_odd)
    a_even = u_even + inv_b * se * se
    a_odd = u_odd + inv_b * so * so

    # DownSample1d zero-pads the *activation output*: phase samples whose
    # global index falls outside [0, T) must be exactly zero.
    sg = (jax.lax.broadcasted_iota(jnp.int32, (1, w2), 1)
          + (pl.program_id(1) * tile_t - _H2))
    keep = jnp.logical_and(sg >= 0, sg < t_valid).astype(jnp.float32)
    a_even = a_even * keep
    a_odd = a_odd * keep

    # DownSample1d (stride-2 conv), polyphase, on the MXU.
    y = jnp.dot(a_even, de_ref[...], preferred_element_type=jnp.float32)
    y = y + jnp.dot(a_odd, do_ref[...], preferred_element_type=jnp.float32)
    o_ref[0] = y.astype(o_ref.dtype)


def activation1d_forward(x, x_shape, up_filter_pad, up_pad_zeros,
                         down_filter_pad, down_pad_zeros_L, down_pad_zeros_R,
                         alpha, up_ratio=2, down_ratio=2, tile_t=512):
    """Mirror of Activation1d.forward (modified signature). Returns (B, C, T)."""
    B, C, T = x_shape
    assert x.shape == (B, C, T)
    assert up_ratio == 2 and down_ratio == 2, "kernel specialised to ratio=2"
    up_taps = jnp.reshape(up_filter_pad, (-1,)).astype(jnp.float32)     # (12,)
    dn_taps = jnp.reshape(down_filter_pad, (-1,)).astype(jnp.float32)   # (12,)
    assert up_taps.shape[0] == 12 and dn_taps.shape[0] == 12
    # The modified module's pad tensors are all-zero by construction; the zero
    # padding is folded into the wrapper guard bands / in-kernel mask, so the
    # tensors are accepted (to keep the forward signature) but never read.
    del up_pad_zeros, down_pad_zeros_L, down_pad_zeros_R

    # -------- static tiling parameters --------------------------------------
    tile = max(128, min(_round_up(tile_t, 128), _round_up(T, 128)))
    k128 = tile // _HALO_BLK
    n_t = -(-T // tile)
    t_pad = n_t * tile
    c_pad = _round_up(C, 8)
    w1 = tile + 2 * _HALO
    w2 = tile + 2 * _H2

    # -------- pre-pad x once: [tile zero guard | x | zeros to t_pad | 128] ---
    x32 = x.astype(jnp.float32)
    xp = jnp.pad(x32, ((0, 0), (0, c_pad - C), (tile, t_pad - T + _HALO_BLK)))
    alpha_p = jnp.pad(jnp.reshape(alpha, (C, 1)).astype(jnp.float32),
                      ((0, c_pad - C), (0, 0)), constant_values=1.0)

    a_even, a_odd, d_even, d_odd = _band_matrices(
        up_taps, dn_taps, tile, ratio_scale=float(up_ratio))

    kernel = functools.partial(_activation1d_kernel, t_valid=T)
    grid_spec = pltpu.PrefetchScalarGridSpec(
        num_scalar_prefetch=0,
        grid=(B, n_t),
        in_specs=[
            # centre tile (shifted by +1 tile because of the left guard band)
            pl.BlockSpec((1, c_pad, tile), lambda b, t: (b, 0, t + 1)),
            # 128-wide left / right neighbour blocks (halo source)
            pl.BlockSpec((1, c_pad, _HALO_BLK),
                         lambda b, t: (b, 0, (t + 1) * k128 - 1)),
            pl.BlockSpec((1, c_pad, _HALO_BLK),
                         lambda b, t: (b, 0, (t + 2) * k128)),
            # banded conv matrices (constant across the grid -> DMA'd once)
            pl.BlockSpec((w1, w2), lambda b, t: (0, 0)),
            pl.BlockSpec((w1, w2), lambda b, t: (0, 0)),
            pl.BlockSpec((w2, tile), lambda b, t: (0, 0)),
            pl.BlockSpec((w2, tile), lambda b, t: (0, 0)),
            # snake per-channel alpha
            pl.BlockSpec((c_pad, 1), lambda b, t: (0, 0)),
        ],
        out_specs=pl.BlockSpec((1, c_pad, tile), lambda b, t: (b, 0, t)),
    )
    y_pad = pl.pallas_call(
        kernel,
        out_shape=jax.ShapeDtypeStruct((B, c_pad, t_pad), x.dtype),
        grid_spec=grid_spec,
        compiler_params=pltpu.CompilerParams(
            dimension_semantics=("parallel", "parallel"),
            vmem_limit_bytes=48 * 1024 * 1024,
        ),
    )(xp, xp, xp, a_even, a_odd, d_even, d_odd, alpha_p)
    return y_pad[:, :C, :T]


# ----------------------------------------------------------------------------
# Pure-JAX reference (direct transcription of the torch ops) for verification.
# ----------------------------------------------------------------------------
def ref_forward(x, up_filt, dn_filt, alpha, ratio=2, k=12):
    B, C, T = x.shape
    pad = k // ratio - 1
    pad_left = pad * ratio + (k - ratio) // 2
    pad_right = pad * ratio + (k - ratio + 1) // 2
    xp = jnp.pad(x, ((0, 0), (0, 0), (pad, pad)))
    Lp = xp.shape[-1]
    # conv_transpose1d(stride=ratio) == zero-stuff + full (un-flipped) conv
    z = jnp.zeros((B, C, ratio * (Lp - 1) + 1), x.dtype)
    z = z.at[..., ::ratio].set(xp)
    Lfull = z.shape[-1] + k - 1
    zp = jnp.pad(z, ((0, 0), (0, 0), (k - 1, k - 1)))
    out = sum(up_filt[j] * zp[..., (k - 1 - j):(k - 1 - j) + Lfull]
              for j in range(k))
    out = ratio * out
    u = out[..., pad_left:out.shape[-1] - pad_right]       # (B, C, ratio*T)
    al = alpha[None, :, None]
    a = u + (1.0 / (al + 1e-9)) * jnp.sin(al * u) ** 2      # snake
    ap = jnp.pad(a, ((0, 0), (0, 0), (k // 2 - 1, k // 2)))
    y = sum(dn_filt[j] * ap[..., j:j + ratio * T:ratio] for j in range(k))
    return y


def _run_case(key, B, C, T, tile_t):
    up_ratio = down_ratio = 2
    up_k = down_k = 12
    x = jax.random.normal(key, (B, C, T), dtype=jnp.float32)

    up_filter = jnp.asarray(kaiser_sinc_filter1d(0.5 / up_ratio, 0.6 / up_ratio, up_k))
    dn_filter = jnp.asarray(kaiser_sinc_filter1d(0.5 / down_ratio, 0.6 / down_ratio, down_k))
    alpha = jnp.linspace(0.5, 1.5, C, dtype=jnp.float32)

    # Pad tensors exactly as the modified torch module builds them (all zeros).
    up_pad_zeros = jnp.zeros((B, C, up_k // up_ratio - 1), jnp.float32)
    down_pad_zeros_L = jnp.zeros((B, C, down_k // 2 - 1), jnp.float32)
    down_pad_zeros_R = jnp.zeros((B, C, down_k // 2), jnp.float32)

    y = activation1d_forward(x, (B, C, T), up_filter, up_pad_zeros, dn_filter,
                             down_pad_zeros_L, down_pad_zeros_R, alpha,
                             up_ratio=up_ratio, down_ratio=down_ratio,
                             tile_t=tile_t)
    y = jax.block_until_ready(y)
    y_ref = ref_forward(x, jnp.reshape(up_filter, (-1,)),
                        jnp.reshape(dn_filter, (-1,)), alpha,
                        ratio=up_ratio, k=up_k)
    assert y.shape == (B, C, T)
    # Tolerance leaves headroom for the MXU's multi-pass f32 accumulation.
    np.testing.assert_allclose(np.asarray(y), np.asarray(y_ref),
                               rtol=1e-3, atol=1e-3)


if __name__ == "__main__":
    key = jax.random.PRNGKey(0)
    k1, k2 = jax.random.split(key)
    # Small shape from the module (single tile, C padded 4 -> 8).
    _run_case(k1, B=2, C=4, T=16, tile_t=512)
    # Multi-tile case exercising the halo blocks, boundary mask and C padding.
    _run_case(k2, B=1, C=6, T=300, tile_t=128)
    print("KERNEL_OK")
</pallas_src>

<mosaic_0001>
module attributes {stable_mosaic.version = 11 : i64} {
  func.func @_activation1d_kernel(%arg0: i32, %arg1: i32, %arg2: memref<1x8x128xf32, #tpu.memory_space<vmem>>, %arg3: memref<1x8x128xf32, #tpu.memory_space<vmem>>, %arg4: memref<1x8x128xf32, #tpu.memory_space<vmem>>, %arg5: memref<144x136xf32, #tpu.memory_space<vmem>>, %arg6: memref<144x136xf32, #tpu.memory_space<vmem>>, %arg7: memref<136x128xf32, #tpu.memory_space<vmem>>, %arg8: memref<136x128xf32, #tpu.memory_space<vmem>>, %arg9: memref<8x1xf32, #tpu.memory_space<vmem>>, %arg10: memref<1x8x128xf32, #tpu.memory_space<vmem>>) attributes {dimension_semantics = [#tpu.dimension_semantics<parallel>, #tpu.dimension_semantics<parallel>], iteration_bounds = array<i64: 2, 1>, scalar_prefetch = 0 : i64, scratch_operands = 0 : i64, tpu.core_type = #tpu.core_type<tc>, window_params = [{transform_indices = @transform_0, window_bounds = array<i64: 1, 8, 128>}, {transform_indices = @transform_1, window_bounds = array<i64: 1, 8, 128>}, {transform_indices = @transform_2, window_bounds = array<i64: 1, 8, 128>}, {pipeline_mode = #tpu.pipeline_mode<synchronous>, transform_indices = @transform_3, window_bounds = array<i64: 144, 136>}, {pipeline_mode = #tpu.pipeline_mode<synchronous>, transform_indices = @transform_4, window_bounds = array<i64: 144, 136>}, {pipeline_mode = #tpu.pipeline_mode<synchronous>, transform_indices = @transform_5, window_bounds = array<i64: 136, 128>}, {pipeline_mode = #tpu.pipeline_mode<synchronous>, transform_indices = @transform_6, window_bounds = array<i64: 136, 128>}, {pipeline_mode = #tpu.pipeline_mode<synchronous>, transform_indices = @transform_7, window_bounds = array<i64: 8, 1>}, {transform_indices = @transform_8, window_bounds = array<i64: 1, 8, 128>}]} {
    %c0 = arith.constant 0 : index
    %c0_0 = arith.constant 0 : index
    %c120 = arith.constant 120 : index
    %0 = vector.load %arg3[%c0, %c0_0, %c120] : memref<1x8x128xf32, #tpu.memory_space<vmem>>, vector<1x8x8xf32>
    %1 = vector.shape_cast %0 : vector<1x8x8xf32> to vector<8x8xf32>
    %c0_1 = arith.constant 0 : index
    %c0_2 = arith.constant 0 : index
    %c0_3 = arith.constant 0 : index
    %2 = vector.load %arg4[%c0_1, %c0_2, %c0_3] : memref<1x8x128xf32, #tpu.memory_space<vmem>>, vector<1x8x8xf32>
    %3 = vector.shape_cast %2 : vector<1x8x8xf32> to vector<8x8xf32>
    %c0_4 = arith.constant 0 : index
    %c0_5 = arith.constant 0 : index
    %c0_6 = arith.constant 0 : index
    %4 = vector.load %arg2[%c0_4, %c0_5, %c0_6] : memref<1x8x128xf32, #tpu.memory_space<vmem>>, vector<1x8x128xf32>
    %5 = vector.shape_cast %4 : vector<1x8x128xf32> to vector<8x128xf32>
    %6 = tpu.concatenate %1, %5, %3 in 1 : vector<8x8xf32>, vector<8x128xf32>, vector<8x8xf32> -> vector<8x144xf32>
    %c0_7 = arith.constant 0 : index
    %c0_8 = arith.constant 0 : index
    %7 = vector.load %arg5[%c0_7, %c0_8] : memref<144x136xf32, #tpu.memory_space<vmem>>, vector<144x136xf32>
    %cst = arith.constant dense<0.000000e+00> : vector<8x136xf32>
    %8 = tpu.matmul %6, %7, %cst {dimension_numbers = #tpu.dot_dimension_numbers<[1], [0], [0], [1], [0, 0, 1, 1], [], []>} : vector<8x144xf32>, vector<144x136xf32>, vector<8x136xf32> -> vector<8x136xf32>
    %c0_9 = arith.constant 0 : index
    %c0_10 = arith.constant 0 : index
    %9 = vector.load %arg6[%c0_9, %c0_10] : memref<144x136xf32, #tpu.memory_space<vmem>>, vector<144x136xf32>
    %cst_11 = arith.constant dense<0.000000e+00> : vector<8x136xf32>
    %10 = tpu.matmul %6, %9, %cst_11 {dimension_numbers = #tpu.dot_dimension_numbers<[1], [0], [0], [1], [0, 0, 1, 1], [], []>} : vector<8x144xf32>, vector<144x136xf32>, vector<8x136xf32> -> vector<8x136xf32>
    %c0_12 = arith.constant 0 : index
    %c0_13 = arith.constant 0 : index
    %11 = vector.load %arg9[%c0_12, %c0_13] : memref<8x1xf32, #tpu.memory_space<vmem>>, vector<8x1xf32>
    %12 = vector.shape_cast %11 : vector<8x1xf32> to vector<8x1xf32>
    %13 = vector.broadcast %12 : vector<8x1xf32> to vector<8x136xf32>
    %cst_14 = arith.constant 9.99999971E-10 : f32
    %14 = vector.broadcast %cst_14 : f32 to vector<8x1xf32>
    %15 = arith.addf %11, %14 : vector<8x1xf32>
    %cst_15 = arith.constant 1.000000e+00 : f32
    %16 = vector.broadcast %cst_15 : f32 to vector<8x1xf32>
    %17 = arith.divf %16, %15 : vector<8x1xf32>
    %18 = vector.shape_cast %17 : vector<8x1xf32> to vector<8x1xf32>
    %19 = vector.broadcast %18 : vector<8x1xf32> to vector<8x136xf32>
    %20 = arith.mulf %13, %8 : vector<8x136xf32>
    %21 = math.sin %20 : vector<8x136xf32>
    %22 = arith.mulf %13, %10 : vector<8x136xf32>
    %23 = math.sin %22 : vector<8x136xf32>
    %24 = arith.mulf %19, %21 : vector<8x136xf32>
    %25 = arith.mulf %24, %21 : vector<8x136xf32>
    %26 = arith.addf %8, %25 : vector<8x136xf32>
    %27 = arith.mulf %19, %23 : vector<8x136xf32>
    %28 = arith.mulf %27, %23 : vector<8x136xf32>
    %29 = arith.addf %10, %28 : vector<8x136xf32>
    %30 = tpu.iota {dimensions = array<i32: 1>} : vector<1x136xi32>
    %c128_i32 = arith.constant 128 : i32
    %31 = arith.muli %arg1, %c128_i32 : i32
    %c4_i32 = arith.constant 4 : i32
    %32 = arith.subi %31, %c4_i32 : i32
    %33 = vector.broadcast %32 : i32 to vector<1x136xi32>
    %34 = arith.addi %30, %33 : vector<1x136xi32>
    %c0_i32 = arith.constant 0 : i32
    %35 = vector.broadcast %c0_i32 : i32 to vector<1x136xi32>
    %36 = arith.cmpi sge, %34, %35 : vector<1x136xi32>
    %c16_i32 = arith.constant 16 : i32
    %37 = vector.broadcast %c16_i32 : i32 to vector<1x136xi32>
    %38 = arith.cmpi slt, %34, %37 : vector<1x136xi32>
    %39 = arith.andi %36, %38 : vector<1x136xi1>
    %40 = arith.extui %39 : vector<1x136xi1> to vector<1x136xi32>
    %41 = arith.sitofp %40 : vector<1x136xi32> to vector<1x136xf32>
    %42 = vector.broadcast %41 : vector<1x136xf32> to vector<8x136xf32>
    %43 = arith.mulf %26, %42 : vector<8x136xf32>
    %44 = vector.broadcast %41 : vector<1x136xf32> to vector<8x136xf32>
    %45 = arith.mulf %29, %44 : vector<8x136xf32>
    %c0_16 = arith.constant 0 : index
    %c0_17 = arith.constant 0 : index
    %46 = vector.load %arg7[%c0_16, %c0_17] : memref<136x128xf32, #tpu.memory_space<vmem>>, vector<136x128xf32>
    %cst_18 = arith.constant dense<0.000000e+00> : vector<8x128xf32>
    %47 = tpu.matmul %43, %46, %cst_18 {dimension_numbers = #tpu.dot_dimension_numbers<[1], [0], [0], [1], [0, 0, 1, 1], [], []>} : vector<8x136xf32>, vector<136x128xf32>, vector<8x128xf32> -> vector<8x128xf32>
    %c0_19 = arith.constant 0 : index
    %c0_20 = arith.constant 0 : index
    %48 = vector.load %arg8[%c0_19, %c0_20] : memref<136x128xf32, #tpu.memory_space<vmem>>, vector<136x128xf32>
    %cst_21 = arith.constant dense<0.000000e+00> : vector<8x128xf32>
    %49 = tpu.matmul %45, %48, %cst_21 {dimension_numbers = #tpu.dot_dimension_numbers<[1], [0], [0], [1], [0, 0, 1, 1], [], []>} : vector<8x136xf32>, vector<136x128xf32>, vector<8x128xf32> -> vector<8x128xf32>
    %50 = arith.addf %47, %49 : vector<8x128xf32>
    %c0_22 = arith.constant 0 : index
    %c0_23 = arith.constant 0 : index
    %c0_24 = arith.constant 0 : index
    %51 = vector.load %arg10[%c0_22, %c0_23, %c0_24] : memref<1x8x128xf32, #tpu.memory_space<vmem>>, vector<1x8x128xf32>
    %52 = vector.shape_cast %51 : vector<1x8x128xf32> to vector<8x128xf32>
    %53 = vector.shape_cast %50 : vector<8x128xf32> to vector<1x8x128xf32>
    tpu.vector_store %arg10[%c0_22, %c0_23, %c0_24], %53 {strides = array<i32>} : memref<1x8x128xf32, #tpu.memory_space<vmem>>, vector<1x8x128xf32>,
    return
  }
  func.func @transform_0(%arg0: i32, %arg1: i32) -> (i32, i32, i32) {
    %c1_i32 = arith.constant 1 : i32
    %0 = arith.addi %arg1, %c1_i32 : i32
    %c0_i32 = arith.constant 0 : i32
    %c0_i32_0 = arith.constant 0 : i32
    return %arg0, %c0_i32, %0 : i32, i32, i32
  }
  func.func @transform_1(%arg0: i32, %arg1: i32) -> (i32, i32, i32) {
    %c1_i32 = arith.constant 1 : i32
    %0 = arith.addi %arg1, %c1_i32 : i32
    %c1_i32_0 = arith.constant 1 : i32
    %1 = arith.muli %0, %c1_i32_0 : i32
    %c1_i32_1 = arith.constant 1 : i32
    %2 = arith.subi %1, %c1_i32_1 : i32
    %c0_i32 = arith.constant 0 : i32
    %c0_i32_2 = arith.constant 0 : i32
    return %arg0, %c0_i32, %2 : i32, i32, i32
  }
  func.func @transform_2(%arg0: i32, %arg1: i32) -> (i32, i32, i32) {
    %c2_i32 = arith.constant 2 : i32
    %0 = arith.addi %arg1, %c2_i32 : i32
    %c1_i32 = arith.constant 1 : i32
    %1 = arith.muli %0, %c1_i32 : i32
    %c0_i32 = arith.constant 0 : i32
    %c0_i32_0 = arith.constant 0 : i32
    return %arg0, %c0_i32, %1 : i32, i32, i32
  }
  func.func @transform_3(%arg0: i32, %arg1: i32) -> (i32, i32) {
    %c0_i32 = arith.constant 0 : i32
    %c0_i32_0 = arith.constant 0 : i32
    %c0_i32_1 = arith.constant 0 : i32
    return %c0_i32, %c0_i32_0 : i32, i32
  }
  func.func @transform_4(%arg0: i32, %arg1: i32) -> (i32, i32) {
    %c0_i32 = arith.constant 0 : i32
    %c0_i32_0 = arith.constant 0 : i32
    %c0_i32_1 = arith.constant 0 : i32
    return %c0_i32, %c0_i32_0 : i32, i32
  }
  func.func @transform_5(%arg0: i32, %arg1: i32) -> (i32, i32) {
    %c0_i32 = arith.constant 0 : i32
    %c0_i32_0 = arith.constant 0 : i32
    %c0_i32_1 = arith.constant 0 : i32
    return %c0_i32, %c0_i32_0 : i32, i32
  }
  func.func @transform_6(%arg0: i32, %arg1: i32) -> (i32, i32) {
    %c0_i32 = arith.constant 0 : i32
    %c0_i32_0 = arith.constant 0 : i32
    %c0_i32_1 = arith.constant 0 : i32
    return %c0_i32, %c0_i32_0 : i32, i32
  }
  func.func @transform_7(%arg0: i32, %arg1: i32) -> (i32, i32) {
    %c0_i32 = arith.constant 0 : i32
    %c0_i32_0 = arith.constant 0 : i32
    %c0_i32_1 = arith.constant 0 : i32
    return %c0_i32, %c0_i32_0 : i32, i32
  }
  func.func @transform_8(%arg0: i32, %arg1: i32) -> (i32, i32, i32) {
    %c0_i32 = arith.constant 0 : i32
    %c0_i32_0 = arith.constant 0 : i32
    return %arg0, %c0_i32, %arg1 : i32, i32, i32
  }
}

</mosaic_0001>

<bundles_post_ra>
// kernel: tpu_custom_call.1
= control target key start
LH: loop header
LB: loop body
LE: loop exit
PB: predicated region body
PF: predicated region fallthrough
CT: control target
= control target key end

     0   :  { %s2589_s0 = inlined_call_operand.vmem [shape: f32[2,8,384], index: 0, kind: input, shape index: {}]   ;;  %s2590_s1 = inlined_call_operand.vmem [shape: f32[2,8,384], index: 1, kind: input, shape index: {}]   ;;  %s2591_s2 = inlined_call_operand.vmem [shape: f32[2,8,384], index: 2, kind: input, shape index: {}]   ;;  %s2592_s3 = inlined_call_operand.vmem [shape: f32[144,136], index: 3, kind: input, shape index: {}]   ;;  %s2593_s4 = inlined_call_operand.vmem [shape: f32[144,136], index: 4, kind: input, shape index: {}]   ;;  %s2594_s5 = inlined_call_operand.vmem [shape: f32[136,128], index: 5, kind: input, shape index: {}]   ;;  %s2595_s6 = inlined_call_operand.vmem [shape: f32[136,128], index: 6, kind: input, shape index: {}]   ;;  %s2596_s7 = inlined_call_operand.vmem [shape: f32[8,1], index: 7, kind: input, shape index: {}]   ;;  %s2597_s8 = inlined_call_operand.hbm [shape: f32[2,8,128], index: 8, kind: output, shape index: {}]  }
   0x1   :  { %2600 = sst [smem:[#allocation7_spill]] %s2590_s1 }
   0x2   :  { %13 = vsyncpa [#allocation3], 0 }
   0x3   :  { %15 = vsyncpa [#allocation3 + $0x1], 0  ;;  %s1814_s27 = smov 0   ;;  %s1816_s28 = smov 0  }
   0x4   :  { %s1818_s29 = smov 0   ;;  %s1820_s30 = smov 0  }
   0x5   :  { %s1822_s9 = smov 0   ;;  %s1824_s10 = smov 0  }
   0x6 LB: > { %2601 = sst [smem:[#allocation5_spill]] %s1752_s9  ;;  %s1415_s11 = sadd.s32 4294967295, %s1756_s10   ;;  %s1756_s10 = sphi %s1824_s10, %s21_s10   ;;  %s1752_s9 = sphi %s1822_s9, %s2615_s9   ;;  %s1748_s30 = sphi %s1820_s30, %s2614_s30   ;;  %s1744_s29 = sphi %s1818_s29, %s2618_s29   ;;  %s1740_s28 = sphi %s1816_s28, %s2617_s28   ;;  %s1736_s27 = sphi %s1814_s27, %s2616_s27  }
   0x7   : > { %s1416_s12 = sadd.s32 4294967294, %s1756_s10   ;;  %s33_s13 = sadd.s32 1, %s1752_s9 }
   0x8   : > { %s235_s14 = sadd.s32 1, %s1744_s29  ;;  %p35_p0 = scmp.ge.s32.totalorder %s33_s13, 2 }
   0x9   : > { %p245_p1 = scmp.ne.s32.totalorder %s1744_s29, %s1740_s28  ;;  %p246_p2 = scmp.eq.s32.totalorder %s1415_s11, 1 }
   0xa   : > { %p251_p3 = scmp.ne.s32.totalorder %s1740_s28, %s1736_s27  ;;  %s2620_s13 = smov (%p35_p0, %s33_s13), 0 }
   0xb   : > { %2602 = sst [smem:[#allocation6_spill]] %s2620_s13  ;;  %p1854_p4 = por %p246_p2, %p245_p1 }
   0xc   : > { %p252_p5 = scmp.eq.s32.totalorder %s1416_s12, 1  ;;  %s230_s16 = ssub.s32 %s1752_s9, %s2620_s13 }
   0xd   : > { %p1419_p6 = scmp.ge.s32.totalorder %s1756_s10, 1  ;;  %p233_p7 = scmp.eq.s32.totalorder %s230_s16, 0 }
   0xe   : > { %p1861_p8 = por %p252_p5, %p251_p3  ;;  %p322_p9 = scmp.lt.s32.totalorder %s1756_s10, 3 }
   0xf   : > { %s1867_s18 = scalar_select %p233_p7, %s1744_s29, %s235_s14  }
  0x10   : > { %p323_p10 = pnand %p1419_p6, %p322_p9 }
  0x11   : > { %p378_p11 = scmp.lt.s32.totalorder (!%p323_p10), %s1748_s30, 1  ;;  %v424_v0 = vld [vmem:[%s2592_s3 + $0x8] sm:$0xff] (!%p323_p10)  ;;  %v426_v1 = vld [vmem:[%s2592_s3 + $0x18] sm:$0xff] (!%p323_p10)  ;;  %v423_v5 = vld [vmem:[%s2592_s3] sm:$0xff] (!%p323_p10)  ;;  %v1758_v16 = vmov (!%p323_p10), 0   ;;  %s2605_s1 = sld [smem:[#allocation7_spill]] (!%p323_p10) }
  0x12   : > { %326 = sbr.rel (%p323_p10) target bundleno = 729 (0x2d9), region = 52  ;;  %v535_v2 = vld [vmem:[%s2593_s4 + $0x8] sm:$0xff] (!%p323_p10)  ;;  %v1453_v3 = vpack.c.bf16 (!%p323_p10), %v426_v1, %v424_v0  ;;  %v537_v4 = vld [vmem:[%s2593_s4 + $0x18] sm:$0xff] (!%p323_p10)  ;;  %v425_v6 = vld [vmem:[%s2592_s3 + $0x10] sm:$0xff] (!%p323_p10)  ;;  %1658 = vset.pattern.permute.xlu1 (!%p323_p10), %v1758_v16  ;;  %1659 = vset.pattern.permute.xlu0 (!%p323_p10), %v1758_v16  ;;  %s1759_s12 = smov (!%p323_p10), 8   ;;  %vm420_vm0 = vcmask (!%p323_p10), 64512  }
  0x13   : > { %v1489_v7 = vpack.c.bf16 (!%p323_p10), %v537_v4, %v535_v2  ;;  %v1455_v8 = vpack.c.bf16 (!%p323_p10), %v425_v6, %v423_v5  ;;  %v534_v9 = vld [vmem:[%s2593_s4] sm:$0xff] (!%p323_p10)  ;;  %v536_v10 = vld [vmem:[%s2593_s4 + $0x10] sm:$0xff] (!%p323_p10)  ;;  %v428_v11 = vld [vmem:[%s2592_s3 + $0x28] sm:$0xff] (!%p323_p10)  ;;  %vm459_vm1 = vcmask (!%p323_p10), 130048   ;;  %s1446_s23 = sshll.u32 (!%p323_p10), %s1748_s30, 7 }
  0x14   : > { %1454 = vmatprep.subr.bf16.mxu0 (!%p323_p10), %v1453_v3  ;;  %v1491_v12 = vpack.c.bf16 (!%p323_p10), %v536_v10, %v534_v9  ;;  %v430_v13 = vld [vmem:[%s2592_s3 + $0x38] sm:$0xff] (!%p323_p10)  ;;  %v539_v14 = vld [vmem:[%s2593_s4 + $0x28] sm:$0xff] (!%p323_p10)  ;;  %v427_v19 = vld [vmem:[%s2592_s3 + $0x20] sm:$0xff] (!%p323_p10)  ;;  %s2542_s14 = scalar_lea.hbm (!%p323_p10), %s2597_s8, %s1446_s23 }
  0x15   : > { %v541_v15 = vld [vmem:[%s2593_s4 + $0x38] sm:$0xff] (!%p323_p10)  ;;  %1490 = vmatprep.subr.bf16.mxu1 (!%p323_p10), %v1489_v7  ;;  %1456 = vmatpush1.bf16.msra.mxu0 (!%p323_p10), %v1455_v8  ;;  %v1457_v17 = vpack.c.bf16 (!%p323_p10), %v430_v13, %v428_v11  ;;  %v429_v20 = vld [vmem:[%s2592_s3 + $0x30] sm:$0xff] (!%p323_p10)  ;;  %v538_v21 = vld [vmem:[%s2593_s4 + $0x20] sm:$0xff] (!%p323_p10) }
  0x16   : > { %v1493_v18 = vpack.c.bf16 (!%p323_p10), %v541_v15, %v539_v14  ;;  %1492 = vmatpush1.bf16.msra.mxu1 (!%p323_p10), %v1491_v12  ;;  %v1459_v22 = vpack.c.bf16 (!%p323_p10), %v429_v20, %v427_v19  ;;  %v540_v23 = vld [vmem:[%s2593_s4 + $0x30] sm:$0xff] (!%p323_p10)  ;;  %v432_v24 = vld [vmem:[%s2592_s3 + $0x48] sm:$0xff] (!%p323_p10)  ;;  %v434_v25 = vld [vmem:[%s2592_s3 + $0x58] sm:$0xff] (!%p323_p10) }
  0x17   : > { %1458 = vmatprep.subr.bf16.mxu0 (!%p323_p10), %v1457_v17  ;;  %v1495_v26 = vpack.c.bf16 (!%p323_p10), %v540_v23, %v538_v21  ;;  %v1461_v27 = vpack.c.bf16 (!%p323_p10), %v434_v25, %v432_v24  ;;  %v543_v28 = vld [vmem:[%s2593_s4 + $0x48] sm:$0xff] (!%p323_p10)  ;;  %v545_v29 = vld [vmem:[%s2593_s4 + $0x58] sm:$0xff] (!%p323_p10)  ;;  %v431_v30 = vld [vmem:[%s2592_s3 + $0x40] sm:$0xff] (!%p323_p10) }
  0x18   : > { %1494 = vmatprep.subr.bf16.mxu1 (!%p323_p10), %v1493_v18  ;;  %v1497_v32 = vpack.c.bf16 (!%p323_p10), %v545_v29, %v543_v28  ;;  %v433_v33 = vld [vmem:[%s2592_s3 + $0x50] sm:$0xff] (!%p323_p10)  ;;  %v542_v34 = vld [vmem:[%s2593_s4 + $0x40] sm:$0xff] (!%p323_p10)  ;;  %v436_v38 = vld [vmem:[%s2592_s3 + $0x68] sm:$0xff] (!%p323_p10) }
  0x19   : > { %s379_s19 = scalar_select %p378_p11, %s1748_s30, 1  ;;  %1460 = vmatpush1.bf16.msra.mxu0 %v1459_v22  ;;  %v1463_v36 = vpack.c.bf16 %v433_v33, %v431_v30  ;;  %v544_v37 = vld [vmem:[%s2593_s4 + $0x50] sm:$0xff]  ;;  %v438_v41 = vld [vmem:[%s2592_s3 + $0x78] sm:$0xff]  ;;  %v547_v42 = vld [vmem:[%s2593_s4 + $0x68] sm:$0xff] }
  0x1a   : > { %1496 = vmatpush1.bf16.msra.mxu1 %v1495_v26  ;;  %v1499_v40 = vpack.c.bf16 %v544_v37, %v542_v34  ;;  %1462 = vmatprep.subr.bf16.mxu0 %v1461_v27  ;;  %v1465_v43 = vpack.c.bf16 %v438_v41, %v436_v38  ;;  %v549_v44 = vld [vmem:[%s2593_s4 + $0x78] sm:$0xff]  ;;  %v435_v45 = vld [vmem:[%s2592_s3 + $0x60] sm:$0xff]  ;;  %v437_v46 = vld [vmem:[%s2592_s3 + $0x70] sm:$0xff]  ;;  %s1768_s30 = smov [#allocation2]  }
  0x1b   : > { %s1907_s21 = smul.u32 24, %s379_s19  ;;  %1498 = vmatprep.subr.bf16.mxu1 %v1497_v32  ;;  %v1501_v47 = vpack.c.bf16 %v549_v44, %v547_v42  ;;  %v546_v48 = vld [vmem:[%s2593_s4 + $0x60] sm:$0xff]  ;;  %v548_v49 = vld [vmem:[%s2593_s4 + $0x70] sm:$0xff]  ;;  %v440_v50 = vld [vmem:[%s2592_s3 + $0x88] sm:$0xff]  ;;  %v1467_v51 = vpack.c.bf16 %v437_v46, %v435_v45 }
  0x1c   : > { %v442_v52 = vld [vmem:[%s2592_s3 + $0x98] sm:$0xff]  ;;  %v551_v53 = vld [vmem:[%s2593_s4 + $0x88] sm:$0xff]  ;;  %v1503_v55 = vpack.c.bf16 %v548_v49, %v546_v48  ;;  %v439_v57 = vld [vmem:[%s2592_s3 + $0x80] sm:$0xff] }
  0x1d   : > { %s394_s25 = scalar_lea.vmem %s2605_s1, %s1907_s21  ;;  %s1450_s26 = sadd.s32 8, %s1907_s21  ;;  %1464 = vmatpush1.bf16.msra.mxu0 %v1463_v36  ;;  %v553_v54 = vld [vmem:[%s2593_s4 + $0x98] sm:$0xff]  ;;  %v1469_v56 = vpack.c.bf16 %v442_v52, %v440_v50  ;;  %v441_v58 = vld [vmem:[%s2592_s3 + $0x90] sm:$0xff]  ;;  %v550_v59 = vld [vmem:[%s2593_s4 + $0x80] sm:$0xff] }
  0x1e   : > { %v405_v31 = vld [vmem:[%s394_s25] sm:$0xff]  ;;  %s385_s24 = scalar_lea.vmem %s2589_s0, %s1450_s26  ;;  %s1452_s1 = sadd.s32 16, %s1907_s21  ;;  %1500 = vmatpush1.bf16.msra.mxu1 %v1499_v40  ;;  %1466 = vmatprep.subr.bf16.mxu0 %v1465_v43  ;;  %v1505_v60 = vpack.c.bf16 %v553_v54, %v551_v53  ;;  %v552_v61 = vld [vmem:[%s2593_s4 + $0x90] sm:$0xff]  ;;  %v444_v62 = vld [vmem:[%s2592_s3 + $0xa8] sm:$0xff]  ;;  %v1471_v2 = vpack.c.bf16 %v441_v58, %v439_v57 }
  0x1f   : > { %409 = vrot.lane.b32.xlu1 %v405_v31, %s1759_s12  ;;  %v407_v35 = vld [vmem:[%s385_s24] sm:$0xff]  ;;  %s403_s25 = scalar_lea.vmem %s2591_s2, %s1452_s1  ;;  %1502 = vmatprep.subr.bf16.mxu1 %v1501_v47  ;;  %v446_v63 = vld [vmem:[%s2592_s3 + $0xb8] sm:$0xff]  ;;  %v555_v0 = vld [vmem:[%s2593_s4 + $0xa8] sm:$0xff]  ;;  %v1507_v3 = vpack.c.bf16 %v552_v61, %v550_v59  ;;  %v1760_v61 = vmov 0.0|0.0   ;;  %s1682_s26 = sshll.u32 %s1768_s30, 4  ;;  %s1683_s26 = int_to_ptr.vmem [resolvable:$false] %s1682_s26 }
  0x20   : > { %413 = vrot.lane.b32.xlu0 %v407_v35, %s1759_s12  ;;  %v406_v39 = vld [vmem:[%s403_s25] sm:$0xff]  ;;  %v557_v1 = vld [vmem:[%s2593_s4 + $0xb8] sm:$0xff]  ;;  %v1473_v4 = vpack.c.bf16 %v446_v63, %v444_v62  ;;  %v445_v6 = vld [vmem:[%s2592_s3 + $0xb0] sm:$0xff]  ;;  %s1684_s21 = scalar_lea.vmem %s1683_s26, 256 }
  0x21   : > { %1468 = vmatpush1.bf16.msra.mxu0 %v1467_v51  ;;  %v443_v5 = vld [vmem:[%s2592_s3 + $0xa0] sm:$0xff]  ;;  %v1509_v8 = vpack.c.bf16 %v557_v1, %v555_v0  ;;  %v556_v9 = vld [vmem:[%s2593_s4 + $0xb0] sm:$0xff]  ;;  %v448_v10 = vld [vmem:[%s2592_s3 + $0xc8] sm:$0xff] }
  0x22   : > { %1504 = vmatpush1.bf16.msra.mxu1 %v1503_v55  ;;  %1470 = vmatprep.subr.bf16.mxu0 %v1469_v56  ;;  %v554_v7 = vld [vmem:[%s2593_s4 + $0xa0] sm:$0xff]  ;;  %v450_v11 = vld [vmem:[%s2592_s3 + $0xd8] sm:$0xff]  ;;  %v559_v12 = vld [vmem:[%s2593_s4 + $0xc8] sm:$0xff]  ;;  %v1475_v14 = vpack.c.bf16 %v445_v6, %v443_v5 }
  0x23   : > { %1506 = vmatprep.subr.bf16.mxu1 %v1505_v60  ;;  %v561_v13 = vld [vmem:[%s2593_s4 + $0xd8] sm:$0xff]  ;;  %v1511_v15 = vpack.c.bf16 %v556_v9, %v554_v7  ;;  %v1477_v16 = vpack.c.bf16 %v450_v11, %v448_v10  ;;  %v447_v17 = vld [vmem:[%s2592_s3 + $0xc0] sm:$0xff]  ;;  %v449_v18 = vld [vmem:[%s2592_s3 + $0xd0] sm:$0xff] }
  0x24   : > { %417 = vrot.lane.b32.xlu0 %v406_v39, %s1759_s12  ;;  %v558_v19 = vld [vmem:[%s2593_s4 + $0xc0] sm:$0xff]  ;;  %v1513_v20 = vpack.c.bf16 %v561_v13, %v559_v12  ;;  %v560_v21 = vld [vmem:[%s2593_s4 + $0xd0] sm:$0xff]  ;;  %v452_v22 = vld [vmem:[%s2592_s3 + $0xe8] sm:$0xff]  ;;  %v1479_v26 = vpack.c.bf16 %v449_v18, %v447_v17  ;;  %s374_s12 = sand.u32 1, %s1740_s28  }
  0x25   : > { %1472 = vmatpush1.bf16.msra.mxu0 %v1471_v2  ;;  %v454_v23 = vld [vmem:[%s2592_s3 + $0xf8] sm:$0xff]  ;;  %v563_v24 = vld [vmem:[%s2593_s4 + $0xe8] sm:$0xff]  ;;  %v451_v27 = vld [vmem:[%s2592_s3 + $0xe0] sm:$0xff]  ;;  %v1515_v28 = vpack.c.bf16 %v560_v21, %v558_v19  ;;  %s1420_s22 = sshll.u32 %s374_s12, 3  ;;  %s1291_s16 = scalar_lea.sflag [#allocation3], %s374_s12 }
  0x26   : > { %1508 = vmatpush1.bf16.msra.mxu1 %v1507_v3  ;;  %1474 = vmatprep.subr.bf16.mxu0 %v1473_v4  ;;  %v565_v25 = vld [vmem:[%s2593_s4 + $0xf8] sm:$0xff]  ;;  %v1481_v29 = vpack.c.bf16 %v454_v23, %v452_v22  ;;  %v453_v30 = vld [vmem:[%s2592_s3 + $0xf0] sm:$0xff]  ;;  %v562_v31 = vld [vmem:[%s2593_s4 + $0xe0] sm:$0xff]  ;;  %s376_s1 = scalar_lea.vmem [#allocation2], %s1420_s22 }
  0x27   : > { %1510 = vmatprep.subr.bf16.mxu1 %v1509_v8  ;;  %v641_v32 = vld [vmem:[%s2596_s7] sm:$0xff]  ;;  %v1517_v33 = vpack.c.bf16 %v565_v25, %v563_v24  ;;  %v564_v34 = vld [vmem:[%s2593_s4 + $0xf0] sm:$0xff]  ;;  %v456_v35 = vld [vmem:[%s2592_s3 + $0x108] sm:$0xff]  ;;  %v1483_v40 = vpack.c.bf16 %v453_v30, %v451_v27  ;;  %s1305_s24 = sshll.u32 %s376_s1, 4  ;;  %s2544_s24 = int_to_ptr.vmem [resolvable:$true] %s1305_s24 }
  0x28   : > { %v458_v36 = vld [vmem:[%s2592_s3 + $0x118] sm:$0xff]  ;;  %v647_v37 = vadd.f32 1e-09, %v641_v32  ;;  %644 = vperm.xlu1 %1658, %v641_v32   ;;  %v567_v38 = vld [vmem:[%s2593_s4 + $0x108] sm:$0xff]  ;;  %v1519_v41 = vpack.c.bf16 %v564_v34, %v562_v31  ;;  %v455_v43 = vld [vmem:[%s2592_s3 + $0x100] sm:$0xff]  ;;  %s1678_s25 = scalar_lea.vmem %s2544_s24, 128  ;;  %p1685_p1 = scmp.lt.s32.totalorder %s2544_s24, %s1683_s26 }
  0x29   : > { %1476 = vmatpush1.bf16.msra.mxu0 %v1475_v14  ;;  %v569_v39 = vld [vmem:[%s2593_s4 + $0x118] sm:$0xff]  ;;  %v1485_v42 = vpack.c.bf16 %v458_v36, %v456_v35  ;;  %v457_v44 = vld [vmem:[%s2592_s3 + $0x110] sm:$0xff]  ;;  %v566_v46 = vld [vmem:[%s2593_s4 + $0x100] sm:$0xff]  ;;  %p1679_p12 = scmp.ne.s32.totalorder %s2544_s24, %s1678_s25  ;;  %p1686_p2 = scmp.lt.s32.totalorder %s1684_s21, %s1678_s25 }
  0x2a   : > { %1512 = vmatpush1.bf16.msra.mxu1 %v1511_v15  ;;  %1478 = vmatprep.subr.bf16.mxu0 %v1477_v16  ;;  %1660 = vrcp.f32 %v647_v37  ;;  %v1521_v45 = vpack.c.bf16 %v569_v39, %v567_v38  ;;  %v568_v47 = vld [vmem:[%s2593_s4 + $0x110] sm:$0xff]  ;;  %v1487_v48 = vpack.c.bf16 %v457_v44, %v455_v43  ;;  %v1126_v56 = vld [vmem:[%s2595_s6] sm:$0xff]  ;;  %v1127_v57 = vld [vmem:[%s2595_s6 + $0x8] sm:$0xff] }
  0x2b   : > { %1514 = vmatprep.subr.bf16.mxu1 %v1513_v20  ;;  %v1523_v49 = vpack.c.bf16 %v568_v47, %v566_v46  ;;  %v1109_v58 = vld [vmem:[%s2594_s5] sm:$0xff]  ;;  %v1526_v59 = vpack.c.bf16 %v1127_v57, %v1126_v56  ;;  %v1110_v60 = vld [vmem:[%s2594_s5 + $0x8] sm:$0xff]  ;;  %v1128_v63 = vld [vmem:[%s2595_s6 + $0x10] sm:$0xff]  ;;  %p1680_p13 = pnand %p1679_p12, %p1854_p4  ;;  %p1687_p3 = por %p1686_p2, %p1685_p1 }
  0x2c   : > { %v1550_v62 = vpack.c.bf16 %v1110_v60, %v1109_v58  ;;  %v1129_v0 = vld [vmem:[%s2595_s6 + $0x18] sm:$0xff]  ;;  %v1111_v1 = vld [vmem:[%s2594_s5 + $0x10] sm:$0xff]  ;;  %v1130_v5 = vld [vmem:[%s2595_s6 + $0x20] sm:$0xff] }
  0x2d   : > { %1480 = vmatpush1.bf16.msra.mxu0 %v1479_v26  ;;  %v1529_v2 = vpack.c.bf16 %v1129_v0, %v1128_v63  ;;  %v1112_v3 = vld [vmem:[%s2594_s5 + $0x18] sm:$0xff]  ;;  %v1131_v6 = vld [vmem:[%s2595_s6 + $0x28] sm:$0xff]  ;;  %v1113_v7 = vld [vmem:[%s2594_s5 + $0x20] sm:$0xff]  ;;  %p1681_p0 = pneg %p1680_p13 }
  0x2e   : > { %1516 = vmatpush1.bf16.msra.mxu1 %v1515_v28  ;;  %1482 = vmatprep.subr.bf16.mxu0 %v1481_v29  ;;  %v1553_v4 = vpack.c.bf16 %v1112_v3, %v1111_v1  ;;  %v1532_v8 = vpack.c.bf16 %v1131_v6, %v1130_v5  ;;  %v1114_v9 = vld [vmem:[%s2594_s5 + $0x28] sm:$0xff]  ;;  %v1132_v11 = vld [vmem:[%s2595_s6 + $0x30] sm:$0xff]  ;;  %v1133_v12 = vld [vmem:[%s2595_s6 + $0x38] sm:$0xff] }
  0x2f   : > { %1518 = vmatprep.subr.bf16.mxu1 %v1517_v33  ;;  %v1556_v10 = vpack.c.bf16 %v1114_v9, %v1113_v7  ;;  %v1115_v13 = vld [vmem:[%s2594_s5 + $0x30] sm:$0xff]  ;;  %v1116_v14 = vld [vmem:[%s2594_s5 + $0x38] sm:$0xff]  ;;  %v1535_v15 = vpack.c.bf16 %v1133_v12, %v1132_v11  ;;  %v1134_v17 = vld [vmem:[%s2595_s6 + $0x40] sm:$0xff]  ;;  %p1688_p5 = pnand %p1687_p3, %p1681_p0 }
  0x30   : > { %v1559_v16 = vpack.c.bf16 %v1116_v14, %v1115_v13  ;;  %v1135_v18 = vld [vmem:[%s2595_s6 + $0x48] sm:$0xff]  ;;  %v1117_v19 = vld [vmem:[%s2594_s5 + $0x40] sm:$0xff]  ;;  %v1136_v23 = vld [vmem:[%s2595_s6 + $0x50] sm:$0xff]  ;;  %v1763_v13 = vmov 2131351028  }
  0x31   : > { %1484 = vmatpush1.bf16.msra.mxu0 %v1483_v40  ;;  %v1118_v20 = vld [vmem:[%s2594_s5 + $0x48] sm:$0xff]  ;;  %v1538_v21 = vpack.c.bf16 %v1135_v18, %v1134_v17  ;;  %v1137_v24 = vld [vmem:[%s2595_s6 + $0x58] sm:$0xff]  ;;  %v1119_v25 = vld [vmem:[%s2594_s5 + $0x50] sm:$0xff]  ;;  %v1765_v17 = vmov 920167782  }
  0x32   : > { %1520 = vmatpush1.bf16.msra.mxu1 %v1519_v41  ;;  %1486 = vmatprep.subr.bf16.mxu0 %v1485_v42  ;;  %v1562_v22 = vpack.c.bf16 %v1118_v20, %v1117_v19  ;;  %v1120_v26 = vld [vmem:[%s2594_s5 + $0x58] sm:$0xff]  ;;  %v1541_v27 = vpack.c.bf16 %v1137_v24, %v1136_v23  ;;  %v1766_v24 = vmov 1326507024  }
  0x33   : > { %1522 = vmatprep.subr.bf16.mxu1 %v1521_v45  ;;  %v1565_v28 = vpack.c.bf16 %v1120_v26, %v1119_v25 }
  0x34   : > { %v1661_v50 = vpop.eup %1660 }
  0x35   : > { %1488 = vmatpush1.bf16.msra.mxu0 %v1487_v48  ;;  %652 = vperm.xlu0 %1659, %v1661_v50  }
  0x36   : > { %1524 = vmatpush1.bf16.msra.mxu1 %v1523_v49  ;;  %1549 = vmatprep.subr.bf16.mxu0 %v1760_v61 }
  0x37   : > { %1525 = vmatprep.subr.bf16.mxu1 %v1760_v61 }
  0x91   : > { %v410_v52 = vpop.permute.xlu1 %409 }
  0x92   : > { %v414_v51 = vpop.permute.xlu0 %413 }
  0x93   : > { %v421_v55 = vsel %vm420_vm0, %v410_v52, %v414_v51 }
  0x96   : > { %v418_v53 = vpop.permute.xlu0 %417 }
  0x97   : > { %v422_v54 = vsel %vm420_vm0, %v414_v51, %v418_v53 }
  0x98   : > { %1424 = vmatprep.mubr.msk.f32.mxu0 %vm459_vm1, %v422_v54  ;;  %1425 = vmatprep.mubr.msk.f32.mxu1 %vm459_vm1, %v422_v54 }
  0x99   : > { %528 = vmatmul.mubr.f32.vlgmr.msra.gmra.mrb[0].mxu0 %v421_v55  ;;  %635 = vmatmul.mubr.f32.vlgmr.msra.gmra.mrb[0].mxu1 %v421_v55 }
  0x9a   : > { %1527 = vmatpush1.bf16.msra.mxu1 %v1526_v59  ;;  %1551 = vmatpush1.bf16.msra.mxu0 %v1550_v62 }
  0x9b   : > { %1528 = vmatprep.subr.bf16.mxu1 %v1760_v61  ;;  %1552 = vmatprep.subr.bf16.mxu0 %v1760_v61 }
  0x9e   : > { %1530 = vmatpush1.bf16.msra.mxu1 %v1529_v2  ;;  %1554 = vmatpush1.bf16.msra.mxu0 %v1553_v4 }
  0x9f   : > { %1531 = vmatprep.subr.bf16.mxu1 %v1760_v61  ;;  %1555 = vmatprep.subr.bf16.mxu0 %v1760_v61 }
  0xa2   : > { %1533 = vmatpush1.bf16.msra.mxu1 %v1532_v8  ;;  %1557 = vmatpush1.bf16.msra.mxu0 %v1556_v10  ;;  %v1761_v8 = vmov 683565275   ;;  %v1762_v10 = vmov 2475754826  }
  0xa3   : > { %1534 = vmatprep.subr.bf16.mxu1 %v1760_v61  ;;  %1558 = vmatprep.subr.bf16.mxu0 %v1760_v61 }
  0xa6   : > { %1536 = vmatpush1.bf16.msra.mxu1 %v1535_v15  ;;  %1560 = vmatpush1.bf16.msra.mxu0 %v1559_v16  ;;  %v1764_v15 = vmov 2102212464  }
  0xa7   : > { %1537 = vmatprep.subr.bf16.mxu1 %v1760_v61  ;;  %1561 = vmatprep.subr.bf16.mxu0 %v1760_v61  ;;  %v645_v29 = vpop.permute.xlu1 %644 }
  0xaa   : > { %1539 = vmatpush1.bf16.msra.mxu1 %v1538_v21  ;;  %1563 = vmatpush1.bf16.msra.mxu0 %v1562_v22 }
  0xab   : > { %1540 = vmatprep.subr.bf16.mxu1 %v1760_v61  ;;  %1564 = vmatprep.subr.bf16.mxu0 %v1760_v61 }
  0xae   : > { %1542 = vmatpush1.bf16.msra.mxu1 %v1541_v27  ;;  %1566 = vmatpush1.bf16.msra.mxu0 %v1565_v28 }
  0xaf   : > { %1543 = vmatprep.subr.bf16.mxu1 %v1760_v61  ;;  %1567 = vmatprep.subr.bf16.mxu0 %v1760_v61 }
 0x16c   : > { %v2190_v30 = vpop.f32.mrb[0].mxu0  ;;  %v2192_v31 = vpop.f32.mrb[0].mxu1 }
 0x16d   : > { %v2195_v32 = vmul.f32 %v645_v29, %v2190_v30  ;;  %v2198_v33 = vmul.f32 %v645_v29, %v2192_v31  ;;  %v2200_v34 = vpop.f32.mrb[1].mxu0  ;;  %v2202_v35 = vpop.f32.mrb[1].mxu1 }
 0x16e   : > { %v2206_v36 = vmul.f32 %v645_v29, %v2200_v34  ;;  %v2215_v42 = vmul.f32 %v645_v29, %v2202_v35 }
 0x16f   : > { %v657_v37 = vand.u32 2147483647, %v2195_v32  ;;  %v660_v38 = vand.u32 2139095040, %v2195_v32  ;;  %v867_v39 = vand.u32 2147483647, %v2198_v33  ;;  %v870_v40 = vand.u32 2139095040, %v2198_v33 }
 0x170   : > { %v761_v41 = vand.u32 2147483647, %v2206_v36  ;;  %v764_v45 = vand.u32 2139095040, %v2206_v36  ;;  %v974_v53 = vand.u32 2139095040, %v2215_v42 }
 0x171   : > { %v661_v43 = vshrl.u32 %v660_v38, 23  ;;  %v664_v44 = vand.u32 8388607, %v657_v37  ;;  %v871_v46 = vshrl.u32 %v870_v40, 23  ;;  %v874_v47 = vand.u32 8388607, %v867_v39 }
 0x172   : > { %v765_v49 = vshrl.u32 %v764_v45, 23  ;;  %v2224_v52 = vand.u32 8388607, %v761_v41  ;;  %v975_v58 = vshrl.u32 %v974_v53, 23 }
 0x173   : > { %v1426_v48 = vadd.s32 4294967169, %v661_v43  ;;  %v665_v50 = vor.u32 8388608, %v664_v44  ;;  %v1434_v51 = vadd.s32 4294967169, %v871_v46  ;;  %v875_v56 = vor.u32 8388608, %v874_v47 }
 0x174   : > { %v1430_v55 = vadd.s32 4294967169, %v765_v49  ;;  %v769_v63 = vor.u32 8388608, %v2224_v52  ;;  %v2234_v6 = vadd.s32 4294967169, %v975_v58 }
 0x175   : > { %v667_v54 = vadd.s32 1, %v1426_v48  ;;  %v877_v57 = vadd.s32 1, %v1434_v51  ;;  %v2227_v62 = vshll.u32 %v665_v50, 8  ;;  %v2232_v5 = vshll.u32 %v875_v56, 8 }
 0x176   : > { %v771_v59 = vadd.s32 1, %v1430_v55 }
 0x177   : > { %vm668_vm2 = vcmp.gt.s32.totalorder %v667_v54, 0  ;;  %vm878_vm3 = vcmp.gt.s32.totalorder %v877_v57, 0 }
 0x178   : > { %v669_v60 = vsel %vm668_vm2, %v667_v54, 0  ;;  %v879_v2 = vsel %vm878_vm3, %v877_v57, 0  ;;  %vm772_vm4 = vcmp.gt.s32.totalorder %v771_v59, 0 }
 0x179   : > { %v670_v0 = vshrl.u32 %v669_v60, 5  ;;  %v671_v1 = vand.u32 31, %v669_v60  ;;  %v2230_v3 = vshrl.u32 %v879_v2, 5  ;;  %v881_v4 = vand.u32 31, %v879_v2 }
 0x17a   : > { %v2238_v12 = vsel %vm772_vm4, %v771_v59, 0 }
 0x17b   : > { %v672_v7 = vsub.s32 32, %v671_v1  ;;  %v674_v9 = vshll.u32 %v1761_v8, %v671_v1  ;;  %v677_v11 = vshll.u32 %v1762_v10, %v671_v1  ;;  %v680_v14 = vshll.u32 %v1763_v13, %v671_v1 }
 0x17c   : > { %v683_v16 = vshll.u32 %v1764_v15, %v671_v1  ;;  %v686_v18 = vshll.u32 %v1765_v17, %v671_v1  ;;  %vm689_vm5 = vcmp.lt.s32.totalorder %v670_v0, 1  ;;  %vm690_vm6 = vcmp.lt.s32.totalorder %v670_v0, 2 }
 0x17d   : > { %v675_v19 = vshrl.u32 %v1762_v10, %v672_v7  ;;  %v678_v20 = vshrl.u32 %v1763_v13, %v672_v7  ;;  %v681_v21 = vshrl.u32 %v1764_v15, %v672_v7  ;;  %v673_v22 = vshrl.u32 %v1761_v8, %v672_v7 }
 0x17e   : > { %v684_v23 = vshrl.u32 %v1765_v17, %v672_v7  ;;  %v687_v25 = vshrl.u32 %v1766_v24, %v672_v7  ;;  %vm691_vm7 = vcmp.lt.s32.totalorder %v670_v0, 3  ;;  %v882_v29 = vsub.s32 32, %v881_v4 }
 0x17f   : > { %v676_v26 = vor.u32 %v675_v19, %v674_v9  ;;  %v679_v27 = vor.u32 %v678_v20, %v677_v11  ;;  %v682_v28 = vor.u32 %v681_v21, %v680_v14  ;;  %vm692_vm8 = vcmp.lt.s32.totalorder %v670_v0, 4 }
 0x180   : > { %v685_v38 = vor.u32 %v684_v23, %v683_v16  ;;  %v688_v40 = vor.u32 %v687_v25, %v686_v18  ;;  %v884_v43 = vshll.u32 %v1761_v8, %v881_v4  ;;  %v887_v51 = vshll.u32 %v1762_v10, %v881_v4 }
 0x181   : > { %v693_v44 = vsel %vm689_vm5, %v673_v22, %v676_v26  ;;  %v694_v45 = vsel %vm692_vm8, %v682_v28, 2102212464  ;;  %v697_v46 = vsel %vm689_vm5, %v676_v26, %v679_v27  ;;  %v701_v47 = vsel %vm689_vm5, %v679_v27, %v682_v28 }
 0x182   : > { %v695_v48 = vsel %vm691_vm7, %v679_v27, %v694_v45  ;;  %v698_v49 = vsel %vm692_vm8, %v685_v38, 920167782  ;;  %v702_v50 = vsel %vm692_vm8, %v688_v40, 1326507024  ;;  %v883_v55 = vshrl.u32 %v1761_v8, %v882_v29 }
 0x183   : > { %v699_v53 = vsel %vm691_vm7, %v682_v28, %v698_v49  ;;  %v703_v54 = vsel %vm691_vm7, %v685_v38, %v702_v50  ;;  %v885_v56 = vshrl.u32 %v1762_v10, %v882_v29  ;;  %v696_v57 = vsel %vm690_vm6, %v693_v44, %v695_v48 }
 0x184   : > { %v700_v58 = vsel %vm690_vm6, %v697_v46, %v699_v53  ;;  %v704_v59 = vsel %vm690_vm6, %v701_v47, %v703_v54  ;;  %v888_v60 = vshrl.u32 %v1763_v13, %v882_v29  ;;  %v890_v16 = vshll.u32 %v1763_v13, %v881_v4 }
 0x185   : > { %v2264_v1 = vmul.u32.u64.low %v2227_v62, %v704_v59  ;;  %v2265_v2 = vmul.u32.u64.high %v2227_v62, %v704_v59, %v2264_v1  ;;  %v2268_v7 = vmul.u32.u64.low %v2227_v62, %v700_v58  ;;  %v2269_v9 = vmul.u32.u64.high %v2227_v62, %v700_v58, %v2268_v7 }
 0x186   : > { %v886_v11 = vor.u32 %v885_v56, %v884_v43  ;;  %v889_v14 = vor.u32 %v888_v60, %v887_v51  ;;  %v891_v18 = vshrl.u32 %v1764_v15, %v882_v29  ;;  %v712_v0 = vmul.u32 %v2227_v62, %v696_v57 }
 0x187   : > { %v893_v19 = vshll.u32 %v1764_v15, %v881_v4  ;;  %v894_v20 = vshrl.u32 %v1765_v17, %v882_v29  ;;  %v897_v21 = vshrl.u32 %v1766_v24, %v882_v29  ;;  %v896_v23 = vshll.u32 %v1765_v17, %v881_v4 }
 0x188   : > { %v892_v22 = vor.u32 %v891_v18, %v890_v16  ;;  %vm899_vm9 = vcmp.lt.s32.totalorder %v2230_v3, 1  ;;  %vm900_vm10 = vcmp.lt.s32.totalorder %v2230_v3, 2  ;;  %vm714_vm11 = vc.u32 %v2265_v2, %v2268_v7 }
 0x189   : > { %v715_v25 = vadd.s32 1, %v2269_v9  ;;  %v895_v26 = vor.u32 %v894_v20, %v893_v19  ;;  %vm901_vm12 = vcmp.lt.s32.totalorder %v2230_v3, 3  ;;  %v898_v62 = vor.u32 %v897_v21, %v896_v23 }
 0x18a   : > { %vm902_vm13 = vcmp.lt.s32.totalorder %v2230_v3, 4  ;;  %v903_v27 = vsel %vm899_vm9, %v883_v55, %v886_v11  ;;  %v907_v28 = vsel %vm899_vm9, %v886_v11, %v889_v14  ;;  %v911_v40 = vsel %vm899_vm9, %v889_v14, %v892_v22 }
 0x18b   : > { %v716_v29 = vsel %vm714_vm11, %v715_v25, %v2269_v9  ;;  %v904_v4 = vsel %vm902_vm13, %v892_v22, 2102212464  ;;  %v908_v38 = vsel %vm902_vm13, %v895_v26, 920167782  ;;  %v912_v46 = vsel %vm902_vm13, %v898_v62, 1326507024 }
 0x18c   : > { %v717_v43 = vadd.s32 %v716_v29, %v712_v0  ;;  %v905_v44 = vsel %vm901_vm12, %v889_v14, %v904_v4  ;;  %v909_v45 = vsel %vm901_vm12, %v892_v22, %v908_v38  ;;  %v913_v49 = vsel %vm901_vm12, %v895_v26, %v912_v46 }
 0x18d   : > { %v906_v47 = vsel %vm900_vm10, %v903_v27, %v905_v44  ;;  %v910_v48 = vsel %vm900_vm10, %v907_v28, %v909_v45  ;;  %v2292_v50 = vshrl.u32 %v2238_v12, 5  ;;  %v914_v53 = vsel %vm900_vm10, %v911_v40, %v913_v49 }
 0x18e   : > { %v718_v51 = vadd.s32 536870912, %v717_v43  ;;  %v2297_v54 = vmul.u32.u64.low %v2232_v5, %v910_v48  ;;  %v2298_v55 = vmul.u32.u64.high %v2232_v5, %v910_v48, %v2297_v54  ;;  %v775_v58 = vand.u32 31, %v2238_v12 }
 0x18f   : > { %v2302_v56 = vmul.u32.u64.low %v2232_v5, %v914_v53  ;;  %v2303_v57 = vmul.u32.u64.high %v2232_v5, %v914_v53, %v2302_v56  ;;  %v2310_v60 = vshll.u32 %v769_v63, 8  ;;  %v971_v3 = vand.u32 2147483647, %v2215_v42 }
 0x190   : > { %v2306_v59 = vshrl.u32 %v718_v51, 30  ;;  %v981_v1 = vadd.s32 1, %v2234_v6  ;;  %v922_v9 = vmul.u32 %v2232_v5, %v906_v47  ;;  %v776_v11 = vsub.s32 32, %v775_v58 }
 0x191   : > { %v778_v14 = vshll.u32 %v1761_v8, %v775_v58  ;;  %vm793_vm14 = vcmp.lt.s32.totalorder %v2292_v50, 1  ;;  %v925_v12 = vadd.s32 1, %v2298_v55  ;;  %v781_v18 = vshll.u32 %v1762_v10, %v775_v58 }
 0x192   : > { %v720_v16 = vshll.u32 %v2306_v59, 30  ;;  %v784_v52 = vshll.u32 %v1763_v13, %v775_v58  ;;  %vm794_vm15 = vcmp.lt.s32.totalorder %v2292_v50, 2  ;;  %vm924_vm1 = vc.u32 %v2303_v57, %v2297_v54 }
 0x193   : > { %v779_v63 = vshrl.u32 %v1762_v10, %v776_v11  ;;  %v787_v5 = vshll.u32 %v1764_v15, %v775_v58  ;;  %v790_v6 = vshll.u32 %v1765_v17, %v775_v58  ;;  %v926_v19 = vsel %vm924_vm1, %v925_v12, %v2298_v55 }
 0x194   : > { %v2327_v0 = vsub.s32 %v717_v43, %v720_v16  ;;  %v782_v20 = vshrl.u32 %v1763_v13, %v776_v11  ;;  %v785_v21 = vshrl.u32 %v1764_v15, %v776_v11  ;;  %v927_v22 = vadd.s32 %v926_v19, %v922_v9 }
 0x195   : > { %v780_v23 = vor.u32 %v779_v63, %v778_v14  ;;  %v788_v25 = vshrl.u32 %v1765_v17, %v776_v11  ;;  %v791_v26 = vshrl.u32 %v1766_v24, %v776_v11  ;;  %v777_v27 = vshrl.u32 %v1761_v8, %v776_v11 }
 0x196   : > { %v723_v62 = vsub.s32 0, %v2327_v0  ;;  %v783_v28 = vor.u32 %v782_v20, %v781_v18  ;;  %v786_v29 = vor.u32 %v785_v21, %v784_v52  ;;  %v928_v4 = vadd.s32 536870912, %v927_v22 }
 0x197   : > { %v789_v38 = vor.u32 %v788_v25, %v787_v5  ;;  %v792_v40 = vor.u32 %v791_v26, %v790_v6  ;;  %vm796_vm2 = vcmp.lt.s32.totalorder %v2292_v50, 4  ;;  %vm795_vm3 = vcmp.lt.s32.totalorder %v2292_v50, 3 }
 0x198   : > { %v1427_v43 = vmin.u32 %v723_v62, %v2327_v0  ;;  %v798_v44 = vsel %vm796_vm2, %v786_v29, 2102212464  ;;  %v801_v45 = vsel %vm793_vm14, %v780_v23, %v783_v28  ;;  %v805_v46 = vsel %vm793_vm14, %v783_v28, %v786_v29 }
 0x199   : > { %v2342_v47 = vshrl.u32 %v928_v4, 30  ;;  %v802_v48 = vsel %vm796_vm2, %v789_v38, 920167782  ;;  %v806_v49 = vsel %vm796_vm2, %v792_v40, 1326507024  ;;  %v797_v53 = vsel %vm793_vm14, %v777_v27, %v780_v23 }
 0x19a   : > { %v725_v51 = vclz %v1427_v43  ;;  %v803_v55 = vsel %vm795_vm3, %v786_v29, %v802_v48  ;;  %v807_v56 = vsel %vm795_vm3, %v789_v38, %v806_v49  ;;  %v799_v9 = vsel %vm795_vm3, %v783_v28, %v798_v44 }
 0x19b   : > { %v930_v58 = vshll.u32 %v2342_v47, 30  ;;  %v804_v11 = vsel %vm794_vm15, %v801_v45, %v803_v55  ;;  %v808_v14 = vsel %vm794_vm15, %v805_v46, %v807_v56  ;;  %vm982_vm4 = vcmp.gt.s32.totalorder %v981_v1, 0 }
 0x19c   : > { %v1428_v16 = vadd.s32 4294967294, %v725_v51  ;;  %v2353_v12 = vmul.u32.u64.low %v2310_v60, %v808_v14  ;;  %v2354_v18 = vmul.u32.u64.high %v2310_v60, %v808_v14, %v2353_v12  ;;  %v983_v6 = vsel %vm982_vm4, %v981_v1, 0 }
 0x19d   : > { %v2356_v52 = vsub.s32 %v927_v22, %v930_v58  ;;  %v2359_v63 = vmul.u32.u64.low %v2310_v60, %v804_v11  ;;  %v2360_v5 = vmul.u32.u64.high %v2310_v60, %v804_v11, %v2359_v63  ;;  %v985_v19 = vand.u32 31, %v983_v6 }
 0x19e   : > { %vm1429_vm5 = vcmp.lt.s32.totalorder %v1428_v16, 0  ;;  %v800_v23 = vsel %vm794_vm15, %v797_v53, %v799_v9  ;;  %v713_v25 = vadd.s32 %v2268_v7, %v2265_v2  ;;  %v978_v62 = vand.u32 8388607, %v971_v3 }
 0x19f   : > { %v728_v20 = vsel %vm1429_vm5, 0, %v1428_v16  ;;  %v933_v21 = vsub.s32 0, %v2356_v52  ;;  %vm818_vm6 = vc.u32 %v2354_v18, %v2359_v63  ;;  %v819_v1 = vadd.s32 1, %v2360_v5 }
 0x1a0   : > { %v729_v26 = vsub.s32 32, %v728_v20  ;;  %v733_v22 = vsub.s32 4294967266, %v728_v20  ;;  %v986_v28 = vsub.s32 32, %v985_v19  ;;  %v816_v50 = vmul.u32 %v2310_v60, %v800_v23 }
 0x1a1   : > { %v1435_v27 = vmin.u32 %v933_v21, %v2356_v52  ;;  %v730_v38 = vshll.u32 %v2327_v0, %v728_v20  ;;  %v820_v7 = vsel %vm818_vm6, %v819_v1, %v2360_v5  ;;  %v979_v45 = vor.u32 8388608, %v978_v62 }
 0x1a2   : > { %v731_v29 = vshrl.u32 %v713_v25, %v729_v26  ;;  %v734_v4 = vadd.s32 127, %v733_v22  ;;  %v989_v40 = vshrl.u32 %v1762_v10, %v986_v28  ;;  %v821_v44 = vadd.s32 %v820_v7, %v816_v50 }
 0x1a3   : > { %v935_v2 = vclz %v1435_v27  ;;  %v988_v49 = vshll.u32 %v1761_v8, %v985_v19  ;;  %v992_v51 = vshrl.u32 %v1763_v13, %v986_v28  ;;  %v984_v56 = vshrl.u32 %v983_v6, 5 }
 0x1a4   : > { %v735_v43 = vshll.u32 %v734_v4, 23  ;;  %v732_v46 = vor.u32 %v731_v29, %v730_v38  ;;  %v822_v55 = vadd.s32 536870912, %v821_v44  ;;  %v995_v60 = vshrl.u32 %v1764_v15, %v986_v28 }
 0x1a5   : > { %v1436_v48 = vadd.s32 4294967294, %v935_v2  ;;  %v990_v0 = vor.u32 %v989_v40, %v988_v49  ;;  %v991_v58 = vshll.u32 %v1762_v10, %v985_v19  ;;  %v998_v9 = vshrl.u32 %v1765_v17, %v986_v28 }
 0x1a6   : > { %v736_v53 = vor.u32 4788187, %v735_v43  ;;  %v2383_v16 = vshrl.u32 %v822_v55, 30  ;;  %v994_v12 = vshll.u32 %v1763_v13, %v985_v19  ;;  %v739_v5 = vcvt.s32.f32 %v732_v46 }
 0x1a7   : > { %vm1437_vm7 = vcmp.lt.s32.totalorder %v1436_v48, 0  ;;  %v993_v21 = vor.u32 %v992_v51, %v991_v58  ;;  %v997_v23 = vshll.u32 %v1764_v15, %v985_v19  ;;  %v1000_v26 = vshll.u32 %v1765_v17, %v985_v19 }
 0x1a8   : > { %v737_v11 = vand.u32 2147483647, %v736_v53  ;;  %v938_v14 = vsel %vm1437_vm7, 0, %v1436_v48  ;;  %v824_v6 = vshll.u32 %v2383_v16, 30  ;;  %v996_v25 = vor.u32 %v995_v60, %v994_v12 }
 0x1a9   : > { %v943_v20 = vsub.s32 4294967266, %v938_v14  ;;  %v1001_v10 = vshrl.u32 %v1766_v24, %v986_v28  ;;  %vm659_vm8 = vcmp.lt.s32.totalorder %v2195_v32, 0  ;;  %v999_v27 = vor.u32 %v998_v9, %v997_v23 }
 0x1aa   : > { %v740_v22 = vmul.f32 %v739_v5, %v737_v11  ;;  %v923_v13 = vadd.s32 %v2297_v54, %v2303_v57  ;;  %v825_v1 = vsub.s32 %v821_v44, %v824_v6  ;;  %v1019_v4 = vshll.u32 %v979_v45, 8 }
 0x1ab   : > { %v944_v62 = vadd.s32 127, %v943_v20  ;;  %v1002_v29 = vor.u32 %v1001_v10, %v1000_v26  ;;  %v939_v50 = vsub.s32 32, %v938_v14  ;;  %v987_v15 = vshrl.u32 %v1761_v8, %v986_v28 }
 0x1ac   : > { %vm1003_vm9 = vcmp.lt.s32.totalorder %v984_v56, 1  ;;  %vm1006_vm10 = vcmp.lt.s32.totalorder %v984_v56, 4  ;;  %v827_v38 = vsub.s32 0, %v825_v1  ;;  %vm1004_vm11 = vcmp.lt.s32.totalorder %v984_v56, 2 }
 0x1ad   : > { %v1008_v17 = vsel %vm1006_vm10, %v996_v25, 2102212464  ;;  %v1011_v24 = vsel %vm1003_vm9, %v990_v0, %v993_v21  ;;  %v741_v19 = vxor.u32 2147483648, %v740_v22  ;;  %v945_v2 = vshll.u32 %v944_v62, 23 }
 0x1ae   : > { %vm1005_vm12 = vcmp.lt.s32.totalorder %v984_v56, 3  ;;  %v1012_v7 = vsel %vm1006_vm10, %v999_v27, 920167782  ;;  %v1431_v40 = vmin.u32 %v827_v38, %v825_v1  ;;  %v1015_v46 = vsel %vm1003_vm9, %v993_v21, %v996_v25 }
 0x1af   : > { %v1013_v43 = vsel %vm1005_vm12, %v996_v25, %v1012_v7  ;;  %v1016_v54 = vsel %vm1006_vm10, %v1002_v29, 1326507024  ;;  %v1007_v57 = vsel %vm1003_vm9, %v987_v15, %v990_v0  ;;  %v1009_v44 = vsel %vm1005_vm12, %v993_v21, %v1008_v17 }
 0x1b0   : > { %v1014_v45 = vsel %vm1004_vm11, %v1011_v24, %v1013_v43  ;;  %v1017_v48 = vsel %vm1005_vm12, %v999_v27, %v1016_v54  ;;  %v829_v8 = vclz %v1431_v40  ;;  %v742_v53 = vsel %vm659_vm8, %v741_v19, %v740_v22  ;;  %v1138_v19 = vld [vmem:[%s2595_s6 + $0x60] sm:$0xff] }
 0x1b1   : > { %v1018_v28 = vsel %vm1004_vm11, %v1015_v46, %v1017_v48  ;;  %v2396_v49 = vmul.u32.u64.low %v1019_v4, %v1014_v45  ;;  %v2397_v51 = vmul.u32.u64.high %v1019_v4, %v1014_v45, %v2396_v49  ;;  %v941_v55 = vshrl.u32 %v923_v13, %v939_v50  ;;  %v1121_v45 = vld [vmem:[%s2594_s5 + $0x60] sm:$0xff]  ;;  %v1122_v48 = vld [vmem:[%s2594_s5 + $0x68] sm:$0xff] }
 0x1b2   : > { %v2402_v60 = vmul.u32.u64.low %v1019_v4, %v1018_v28  ;;  %v2403_v58 = vmul.u32.u64.high %v1019_v4, %v1018_v28, %v2402_v60  ;;  %v1432_v9 = vadd.s32 4294967294, %v829_v8  ;;  %v1010_v0 = vsel %vm1004_vm11, %v1007_v57, %v1009_v44 }
 0x1b3   : > { %v940_v11 = vshll.u32 %v2356_v52, %v938_v14  ;;  %v946_v12 = vor.u32 4788187, %v945_v2  ;;  %vm2409_vm13 = vcmp.le.f32.partialorder %v657_v37, 0.7853982  ;;  %v1029_v20 = vadd.s32 1, %v2397_v51  ;;  %v1139_v2 = vld [vmem:[%s2595_s6 + $0x68] sm:$0xff] }
 0x1b4   : > { %vm1433_vm14 = vcmp.lt.s32.totalorder %v1432_v9, 0  ;;  %v743_v21 = vsub.s32 4, %v2306_v59  ;;  %v745_v23 = vsel %vm2409_vm13, %v2195_v32, %v742_v53  ;;  %v1026_v25 = vmul.u32 %v1019_v4, %v1010_v0  ;;  %v1141_v53 = vld [vmem:[%s2595_s6 + $0x78] sm:$0xff]  ;;  %v1123_v0 = vld [vmem:[%s2594_s5 + $0x70] sm:$0xff] }
 0x1b5   : > { %v942_v56 = vor.u32 %v941_v55, %v940_v11  ;;  %v832_v6 = vsel %vm1433_vm14, 0, %v1432_v9  ;;  %vm1028_vm15 = vc.u32 %v2403_v58, %v2396_v49  ;;  %v817_v37 = vadd.s32 %v2359_v63, %v2354_v18  ;;  %v1124_v11 = vld [vmem:[%s2594_s5 + $0x78] sm:$0xff] }
 0x1b6   : > { %v833_v52 = vsub.s32 32, %v832_v6  ;;  %v837_v14 = vsub.s32 4294967266, %v832_v6  ;;  %v1030_v26 = vsel %vm1028_vm15, %v1029_v20, %v2397_v51  ;;  %v947_v10 = vand.u32 2147483647, %v946_v12  ;;  %v1140_v51 = vld [vmem:[%s2595_s6 + $0x70] sm:$0xff] }
 0x1b7   : > { %v1031_v22 = vadd.s32 %v1030_v26, %v1026_v25  ;;  %1662 = vcosq.f32 %v745_v23  ;;  %v834_v62 = vshll.u32 %v825_v1, %v832_v6  ;;  %v949_v29 = vcvt.s32.f32 %v942_v56 }
 0x1b8   : > { %v835_v27 = vshrl.u32 %v817_v37, %v833_v52  ;;  %v838_v13 = vadd.s32 127, %v837_v14  ;;  %1664 = vsinq.f32 %v745_v23  ;;  %v744_v38 = vsel %vm659_vm8, %v743_v21, %v2306_v59 }
 0x1b9   : > { %v1032_v50 = vadd.s32 536870912, %v1031_v22  ;;  %v950_v18 = vmul.f32 %v949_v29, %v947_v10  ;;  %v746_v1 = vsel %vm2409_vm13, 0, %v744_v38  ;;  %v847_v46 = vsub.s32 4, %v2383_v16  ;;  %v1125_v38 = vld [vmem:[%s2594_s5 + $0x80] sm:$0xff] }
 0x1ba   : > { %v836_v4 = vor.u32 %v835_v27, %v834_v62  ;;  %v839_v15 = vshll.u32 %v838_v13, 23  ;;  %v750_v57 = vadd.s32 3, %v746_v1  ;;  %v1544_v44 = vpack.c.bf16 %v1139_v2, %v1138_v19  ;;  %v1142_v62 = vld [vmem:[%s2595_s6 + $0x80] sm:$0xff] }
 0x1bb   : > { %v2426_v63 = vshrl.u32 %v1032_v50, 30  ;;  %v951_v59 = vxor.u32 2147483648, %v950_v18  ;;  %vm869_vm1 = vcmp.lt.s32.totalorder %v2198_v33, 0  ;;  %vm763_vm2 = vcmp.lt.s32.totalorder %v2206_v36, 0 }
 0x1bc   : > { %v840_v17 = vor.u32 4788187, %v839_v15  ;;  %v843_v40 = vcvt.s32.f32 %v836_v4  ;;  %vm2457_vm3 = vcmp.le.f32.partialorder %v761_v41, 0.7853982  ;;  %1545 = vmatpush1.bf16.msra.mxu1 %v1544_v44  ;;  %v848_v20 = vsel %vm763_vm2, %v847_v46, %v2383_v16 }
 0x1bd   : > { %v1034_v24 = vshll.u32 %v2426_v63, 30  ;;  %v952_v12 = vsel %vm869_vm1, %v951_v59, %v950_v18  ;;  %v1568_v41 = vpack.c.bf16 %v1122_v48, %v1121_v45  ;;  %1546 = vmatprep.subr.bf16.mxu1 %v1760_v61  ;;  %v751_v23 = vand.u32 3, %v750_v57 }
 0x1be   : > { %v841_v7 = vand.u32 2147483647, %v840_v17  ;;  %v1547_v6 = vpack.c.bf16 %v1141_v53, %v1140_v51  ;;  %v1571_v14 = vpack.c.bf16 %v1124_v11, %v1123_v0  ;;  %v850_v26 = vsel %vm2457_vm3, 0, %v848_v20 }
 0x1bf   : > { %v2437_v43 = vsub.s32 %v1031_v22, %v1034_v24  ;;  %1569 = vmatpush1.bf16.msra.mxu0 %v1568_v41  ;;  %vm2480_vm4 = vcmp.le.f32.partialorder %v867_v39, 0.7853982  ;;  %v1767_v22 = vmov 0.0   ;;  %vm753_vm5 = vcmp.eq.s32.totalorder %v751_v23, 0 }
 0x1c0   : > { %v844_v54 = vmul.f32 %v843_v40, %v841_v7  ;;  %1570 = vmatprep.subr.bf16.mxu0 %v1760_v61  ;;  %1548 = vmatpush1.bf16.msra.mxu1 %v1547_v6  ;;  %vm756_vm6 = vcmp.eq.s32.totalorder %v751_v23, 2  ;;  %v955_v61 = vsel %vm2480_vm4, %v2198_v33, %v952_v12  ;;  %v1087_v39 = vlaneseq }
 0x1c1   : > { %v1663_v8 = vpop.eup %1662  ;;  %v1037_v28 = vsub.s32 0, %v2437_v43  ;;  %1178 = vmatprep.subr.mxu1 %v1767_v22  ;;  %v1027_v29 = vadd.s32 %v2396_v49, %v2403_v58  ;;  %v854_v4 = vadd.s32 3, %v850_v26  ;;  %v953_v15 = vsub.s32 4, %v2342_v47 }
 0x1c2   : > { %v1665_v55 = vpop.eup %1664  ;;  %v845_v60 = vxor.u32 2147483648, %v844_v54  ;;  %v757_v56 = vxor.u32 2147483648, %v1663_v8  ;;  %vm752_vm8 = vcmp.lt.s32.totalorder %v751_v23, 2  ;;  %v1088_v19 = vand.u32 127, %v1087_v39 }
 0x1c3   : > { %v1439_v5 = vmin.u32 %v1037_v28, %v2437_v43  ;;  %v754_v37 = vxor.u32 2147483648, %v1665_v55  ;;  %1572 = vmatpush1.bf16.msra.mxu0 %v1571_v14  ;;  %vm749_vm9 = vweird.f32 %v2195_v32  ;;  %v855_v2 = vand.u32 3, %v854_v4 }
 0x1c4   : > { %v846_v21 = vsel %vm763_vm2, %v845_v60, %v844_v54  ;;  %v758_v13 = vsel %vm756_vm6, %v757_v56, %v1665_v55  ;;  %1251 = vmatprep.subr.mxu0 %v1767_v22  ;;  %1179 = vmatpush1.msra.mxu1 %v1142_v62  ;;  %v954_v7 = vsel %vm869_vm1, %v953_v15, %v2342_v47  ;;  %v2503_v54 = vpop.permute.xlu0 %652  ;;  %vm853_vm10 = vweird.f32 %v2206_v36 }
 0x1c5   : > { %v1039_v25 = vclz %v1439_v5  ;;  %v849_v52 = vsel %vm2457_vm3, %v2206_v36, %v846_v21  ;;  %v755_v27 = vsel %vm753_vm5, %v1663_v8, %v754_v37  ;;  %v956_v48 = vsel %vm2480_vm4, 0, %v954_v7 }
 0x1c6   : > { %1666 = vcosq.f32 %v849_v52  ;;  %v759_v24 = vsel %vm752_vm8, %v755_v27, %v758_v13  ;;  %v1093_v8 = vadd.s32 4294967292, %v1088_v19  ;;  %vm860_vm11 = vcmp.eq.s32.totalorder %v855_v2, 2 }
 0x1c7   : > { %v1440_v16 = vadd.s32 4294967294, %v1039_v25  ;;  %1668 = vsinq.f32 %v849_v52  ;;  %1252 = vmatpush1.msra.mxu0 %v1125_v38  ;;  %v760_v46 = vsel %vm749_vm9, nan, %v759_v24  ;;  %vm857_vm12 = vcmp.eq.s32.totalorder %v855_v2, 0 }
 0x1c8   : > { %1670 = vcosq.f32 %v955_v61  ;;  %v1075_v28 = vmul.f32 %v760_v46, %v2503_v54  ;;  %vm856_vm13 = vcmp.lt.s32.totalorder %v855_v2, 2  ;;  %v960_v60 = vadd.s32 3, %v956_v48 }
 0x1c9   : > { %vm1441_vm7 = vcmp.lt.s32.totalorder %v1440_v16, 0  ;;  %1672 = vsinq.f32 %v955_v61  ;;  %v1057_v9 = vsub.s32 4, %v2426_v63  ;;  %vm1095_vm14 = vcmp.ge.s32.totalorder %v1093_v8, 0 }
 0x1ca   : > { %v1042_v50 = vsel %vm1441_vm7, 0, %v1440_v16  ;;  %vm1097_vm15 = vcmp.lt.s32.totalorder %v1093_v8, 16  ;;  %v1077_v41 = vmul.f32 %v1075_v28, %v760_v46  ;;  %vm973_vm1 = vcmp.lt.s32.totalorder %v2215_v42, 0 }
 0x1cb   : > { %v1043_v18 = vsub.s32 32, %v1042_v50  ;;  %v1047_v17 = vsub.s32 4294967266, %v1042_v50  ;;  %v1044_v1 = vshll.u32 %v2437_v43, %v1042_v50  ;;  %vm2516_vm2 = vcmp.le.f32.partialorder %v971_v3, 0.7853982  ;;  %vm1099_vm3 = vmand %vm1095_vm14, %vm1097_vm15 }
 0x1cc   : > { %v961_v25 = vand.u32 3, %v960_v60  ;;  %v1058_v37 = vsel %vm973_vm1, %v1057_v9, %v2426_v63  ;;  %v1079_v26 = vadd.f32 %v1077_v41, %v2190_v30  ;;  %v1442_v10 = vsel %vm1099_vm3, 1.0, %v1767_v22 }
 0x1cd   : > { %v1045_v49 = vshrl.u32 %v1027_v29, %v1043_v18  ;;  %v1048_v58 = vadd.s32 127, %v1047_v17  ;;  %v1060_v62 = vsel %vm2516_vm2, 0, %v1058_v37  ;;  %vm959_vm7 = vweird.f32 %v2198_v33 }
 0x1ce   : > { %vm963_vm4 = vcmp.eq.s32.totalorder %v961_v25, 0  ;;  %vm966_vm5 = vcmp.eq.s32.totalorder %v961_v25, 2  ;;  %v1105_v13 = vmul.f32 %v1442_v10, %v1079_v26  ;;  %v1064_v39 = vadd.s32 3, %v1060_v62 }
 0x1cf   : > { %v1046_v40 = vor.u32 %v1045_v49, %v1044_v1  ;;  %v1049_v59 = vshll.u32 %v1048_v58, 23  ;;  %vm962_vm6 = vcmp.lt.s32.totalorder %v961_v25, 2 }
 0x1d0   : > { %v1667_v57 = vpop.eup %1666 }
 0x1d1   : > { %v1669_v44 = vpop.eup %1668  ;;  %v1050_v45 = vor.u32 4788187, %v1049_v59  ;;  %v861_v43 = vxor.u32 2147483648, %v1667_v57  ;;  %v1053_v51 = vcvt.s32.f32 %v1046_v40 }
 0x1d2   : > { %v858_v32 = vxor.u32 2147483648, %v1669_v44  ;;  %v1671_v0 = vpop.eup %1670 }
 0x1d3   : > { %v1051_v47 = vand.u32 2147483647, %v1050_v45  ;;  %v862_v53 = vsel %vm860_vm11, %v861_v43, %v1669_v44  ;;  %v1673_v5 = vpop.eup %1672  ;;  %v967_v14 = vxor.u32 2147483648, %v1671_v0  ;;  %vm1063_vm11 = vweird.f32 %v2215_v42 }
 0x1d4   : > { %v859_v55 = vsel %vm857_vm12, %v1667_v57, %v858_v32  ;;  %v964_v36 = vxor.u32 2147483648, %v1673_v5 }
 0x1d5   : > { %v1054_v11 = vmul.f32 %v1053_v51, %v1051_v47  ;;  %v863_v12 = vsel %vm856_vm13, %v859_v55, %v862_v53  ;;  %v968_v27 = vsel %vm966_vm5, %v967_v14, %v1673_v5 }
 0x1d6   : > { %v864_v20 = vsel %vm853_vm10, nan, %v863_v12  ;;  %v965_v61 = vsel %vm963_vm4, %v1671_v0, %v964_v36 }
 0x1d7   : > { %v1055_v21 = vxor.u32 2147483648, %v1054_v11  ;;  %v1076_v23 = vmul.f32 %v864_v20, %v2503_v54  ;;  %v969_v30 = vsel %vm962_vm6, %v965_v61, %v968_v27 }
 0x1d8   : > { %v970_v22 = vsel %vm959_vm7, nan, %v969_v30 }
 0x1d9   : > { %v1056_v6 = vsel %vm973_vm1, %v1055_v21, %v1054_v11  ;;  %v1078_v52 = vmul.f32 %v1076_v23, %v864_v20  ;;  %v1081_v38 = vmul.f32 %v970_v22, %v2503_v54 }
 0x1da   : > { %v1059_v16 = vsel %vm2516_vm2, %v2215_v42, %v1056_v6 }
 0x1db   : > { %1674 = vcosq.f32 %v1059_v16  ;;  %v1080_v3 = vadd.f32 %v1078_v52, %v2200_v34  ;;  %v1065_v34 = vand.u32 3, %v1064_v39  ;;  %v1083_v33 = vmul.f32 %v1081_v38, %v970_v22 }
 0x1dc   : > { %1676 = vsinq.f32 %v1059_v16 }
 0x1dd   : > { %v1106_v63 = vmul.f32 0.0, %v1080_v3  ;;  %vm1070_vm8 = vcmp.eq.s32.totalorder %v1065_v34, 2  ;;  %vm1067_vm9 = vcmp.eq.s32.totalorder %v1065_v34, 0  ;;  %vm1066_vm10 = vcmp.lt.s32.totalorder %v1065_v34, 2 }
 0x1de   : > { %v1085_v19 = vadd.f32 %v1083_v33, %v2192_v31 }
 0x1df   : > { %1444 = vmatprep.mubr.msk.f32.mxu0 %vm420_vm0, %v1106_v63 }
 0x1e0   : > { %1284 = vmatmul.mubr.f32.vlgmr.msra.gmra.mrb[2].mxu0 %v1105_v13  ;;  %v1107_v40 = vmul.f32 %v1442_v10, %v1085_v19 }
 0x1e5   : > { %v1675_v29 = vpop.eup %1674 }
 0x1e6   : > { %v1677_v50 = vpop.eup %1676  ;;  %v1071_v4 = vxor.u32 2147483648, %v1675_v29 }
 0x1e7   : > { %v1068_v15 = vxor.u32 2147483648, %v1677_v50 }
 0x1e8   : > { %v1072_v18 = vsel %vm1070_vm8, %v1071_v4, %v1677_v50 }
 0x1e9   : > { %v1069_v17 = vsel %vm1067_vm9, %v1675_v29, %v1068_v15 }
 0x1ea   : > { %v1073_v24 = vsel %vm1066_vm10, %v1069_v17, %v1072_v18 }
 0x1eb   : > { %v1074_v1 = vsel %vm1063_vm11, nan, %v1073_v24 }
 0x1ec   : > { %v1082_v49 = vmul.f32 %v1074_v1, %v2503_v54 }
 0x1ee   : > { %v1084_v58 = vmul.f32 %v1082_v49, %v1074_v1 }
 0x1f0   : > { %v1086_v2 = vadd.f32 %v1084_v58, %v2202_v35 }
 0x1f2   : > { %v1108_v7 = vmul.f32 0.0, %v1086_v2 }
 0x1f4   : > { %1443 = vmatprep.mubr.msk.f32.mxu1 %vm420_vm0, %v1108_v7 }
 0x1f5   : > { %1211 = vmatmul.mubr.f32.vlgmr.msra.gmra.mrb[2].mxu1 %v1107_v40 }
 0x2b3   : > { %v1285_v59 = vpop.f32.mrb[2].mxu0 }
 0x2b4   : > { %v1287_v46 = vpop.f32.mrb[3].mxu0 }
 0x2c8   : > { %v1212_v42 = vpop.f32.mrb[2].mxu1 }
 0x2c9   : > { %v1286_v54 = vadd.f32 %v1285_v59, %v1212_v42  ;;  %v1214_v57 = vpop.f32.mrb[3].mxu1 }
 0x2cb   : > { %1289 = vst [vmem:[%s376_s1] sm:$0xff] %v1286_v54 }
 0x2cc   : > { %1691 = shalt.err (!%p1688_p5)
}
 0x2cd   : > { %s1692_s20 = scalar_lea.hbm %s2542_s14, 128  ;;  %s1696_s12 = scalar_lea.hbm %s2597_s8, 256 }
 0x2ce   : > { %p1693_p6 = scmp.ne.s32.totalorder %s2542_s14, %s1692_s20  ;;  %p1697_p10 = scmp.lt.u32.totalorder %s2542_s14, %s2597_s8 }
 0x2cf   : > { %p1698_p11 = scmp.lt.u32.totalorder %s1696_s12, %s1692_s20  ;;  %p1700_p13 = scmp.lt.u32.totalorder %s1692_s20, %s2542_s14 }
 0x2d0   : > { %p1694_p7 = pnand %p1693_p6, %p1854_p4 }
 0x2d1   : > { %p1699_p12 = por %p1698_p11, %p1697_p10 }
 0x2d2   : > { %p1695_p9 = pneg %p1694_p7 }
 0x2d3   : > { %p1701_p0 = por %p1700_p13, %p1699_p12 }
 0x2d5   : > { %p1702_p1 = pnand %p1701_p0, %p1695_p9 }
 0x2d7   : > { %1705 = shalt.err (!%p1702_p1)
}
 0x2d8   : > { %1592 = dma.vmem_to_hbm [thread:$0]  (%p1854_p4), %s2544_s24, 128, %s2542_s14, %s1291_s16  }
 0x2d9 PF: > { %p1599_p2 = scmp.ge.s32.totalorder %s1756_s10, 2  ;;  %s1317_s1 = sand.u32 1, %s1736_s27  }
 0x2da   : > { %s1318_s11 = scalar_lea.sflag [#allocation3], %s1317_s1 }
 0x2db   : > { %p1595_p3 = pnand %p1599_p2, %p1861_p8 }
 0x2dd   : > { %1731 = dma.done.wait (!%p1595_p3), %s1318_s11, 128  }
 0x2de   : > { %1733 = vsyncadd (!%p1595_p3), %s1318_s11, 4294967168  ;;  %s21_s10 = sadd.s32 1, %s1756_s10   ;;  %s2614_s30 = sld [smem:[#allocation5_spill]] }
 0x2df   : > { %p18_p5 = scmp.ge.s32.totalorder %s21_s10, 4   ;;  %s2615_s9 = sld [smem:[#allocation6_spill]] }
 0x2e0   : > { %s2616_s27 = smov %s1740_s28  ;;  %s2617_s28 = smov %s1744_s29 }
 0x2e1   : > { %s2618_s29 = smov %s1867_s18  ;;  %20 = sbr.rel (!%p18_p5) target bundleno = 6 (0x6), region = 93 }
 0x2e8   :  { %1323 = vsyncpa [#allocation3], 1 }
 0x2e9   :  { %1325 = vsyncpa [#allocation3 + $0x1], 1 }

</bundles_post_ra>
